<compile_context>
chip_gen: v7x
topology: tpu7x:2x2x1
jax: 0.10.0
libtpu: 0.0.40
codegen_flags: <defaults>
</compile_context>

<pallas_src>
import functools

import jax
import jax.numpy as jnp
from jax import lax
from jax.experimental import pallas as pl
from jax.experimental.pallas import tpu as pltpu

_EPS = 1e-5


def _vmem_limit_bytes():
    """~75% of physical VMEM (v5e/v6e: 96 MiB, v7x: 48 MiB), capped at 100 MiB."""
    cap = None
    try:
        cap = getattr(pltpu.get_tpu_info(), "vmem_capacity_bytes", None)
    except Exception:
        cap = None
    if not cap:
        cap = 64 * 1024 * 1024          # conservative fallback (v7x-sized)
    return min(int(cap * 3 // 4), 100 * 1024 * 1024)


# ---------------------------------------------------------------------------
# Kernel 1: conv1 (1x1) as a channel-major matmul + BN1 per-image partial stats
# ---------------------------------------------------------------------------
def conv1_kernel(x_ref, w1t_ref, h1_ref, sum_ref, sq_ref):
    x = x_ref[0].astype(jnp.bfloat16)                       # (c_in, HW)
    h = jnp.dot(w1t_ref[...], x,                            # (C, HW) f32
                preferred_element_type=jnp.float32)
    hb = h.astype(jnp.bfloat16)                             # storage rounding
    h1_ref[0] = hb
    hf = hb.astype(jnp.float32)
    sum_ref[0] = jnp.sum(hf, axis=-1, keepdims=True)        # (C, 1) partials
    sq_ref[0] = jnp.sum(hf * hf, axis=-1, keepdims=True)


# ---------------------------------------------------------------------------
# Kernel 2: BN1+ReLU (folded affine) + 3x3 dilated conv (single wide-K matmul)
#           + BN2 per-image partial stats.  One image per grid step.
# ---------------------------------------------------------------------------
def conv2_kernel(h1_ref, colid_ref, s1_ref, t1_ref, w2t_ref,
                 h2_ref, sum_ref, sq_ref, *, H, W, d):
    HW = H * W
    h1 = h1_ref[0].astype(jnp.float32)                      # (C, HW)
    # BN1 affine + ReLU in f32 (scale/shift finalized outside the kernel).
    act = jnp.maximum(h1 * s1_ref[...] + t1_ref[...], 0.0)  # (C, HW)

    lane = lax.broadcasted_iota(jnp.int32, (1, HW), 1)      # flat pixel index
    col = colid_ref[...]                                    # (1, HW) x-coordinate

    taps = []
    for t in range(9):
        ky, kx = divmod(t, 3)
        dy, dx = (ky - 1) * d, (kx - 1) * d
        s = dy * W + dx                                     # flat input offset
        rolled = act if s == 0 else pltpu.roll(act, shift=(-s) % HW, axis=1)
        conds = []
        if dy > 0:
            conds.append(lane < (H - dy) * W)               # y + dy < H
        if dy < 0:
            conds.append(lane >= (-dy) * W)                 # y + dy >= 0
        if dx > 0:
            conds.append(col < (W - dx))                    # x + dx < W
        if dx < 0:
            conds.append(col >= (-dx))                      # x + dx >= 0
        if conds:
            valid = functools.reduce(jnp.logical_and, conds)
            rolled = jnp.where(valid, rolled, 0.0)          # zero-padding + kill wrap
        taps.append(rolled)

    # Wide-K operand: (9C, HW), sublane-aligned f32 concat, single bf16 cast.
    wide = jnp.concatenate(taps, axis=0).astype(jnp.bfloat16)
    acc = jnp.dot(w2t_ref[...], wide,                       # (C, HW) f32
                  preferred_element_type=jnp.float32)
    accb = acc.astype(jnp.bfloat16)
    h2_ref[0] = accb
    accf = accb.astype(jnp.float32)
    sum_ref[0] = jnp.sum(accf, axis=-1, keepdims=True)
    sq_ref[0] = jnp.sum(accf * accf, axis=-1, keepdims=True)


# ---------------------------------------------------------------------------
# Kernel 3: BN2+ReLU (folded affine) + conv3 (1x1) + BN3 per-image partial stats
# ---------------------------------------------------------------------------
def conv3_kernel(h2_ref, s2_ref, t2_ref, w3t_ref, h3_ref, sum_ref, sq_ref):
    a = jnp.maximum(h2_ref[0].astype(jnp.float32) * s2_ref[...] + t2_ref[...],
                    0.0)                                    # (C, HW) f32
    h3 = jnp.dot(w3t_ref[...], a.astype(jnp.bfloat16),      # (c_out, HW) f32
                 preferred_element_type=jnp.float32)
    h3b = h3.astype(jnp.bfloat16)
    h3_ref[0] = h3b
    hf = h3b.astype(jnp.float32)
    sum_ref[0] = jnp.sum(hf, axis=-1, keepdims=True)
    sq_ref[0] = jnp.sum(hf * hf, axis=-1, keepdims=True)


# ---------------------------------------------------------------------------
# Kernel 4: BN3 (folded affine) + identity residual + ReLU
# ---------------------------------------------------------------------------
def bn3_residual_kernel(h3_ref, s3_ref, t3_ref, x_ref, o_ref):
    o_ref[0] = jnp.maximum(
        h3_ref[0].astype(jnp.float32) * s3_ref[...] + t3_ref[...] + x_ref[0],
        0.0)


# ---------------------------------------------------------------------------
# BN finalize: training-mode batch stats (biased var) folded into an affine
# ---------------------------------------------------------------------------
def _finalize_bn(s, sq, gamma, beta, count):
    mean = s / count
    var = jnp.maximum(sq / count - mean * mean, 0.0)
    scale = gamma * lax.rsqrt(var + _EPS)
    shift = beta - mean * scale
    return scale, shift


# ---------------------------------------------------------------------------
# Wrapper
# ---------------------------------------------------------------------------
def bottle_block_forward(x_nchw, params, dilation=1):
    """BottleBlock forward (stride=1, downsample=None => identity residual)."""
    N, c_in, H, W = x_nchw.shape
    C = params["w1"].shape[1]            # bottleneck width (out_ch)
    c_out = params["w3"].shape[1]        # out_ch * expansion
    assert c_in == c_out, "identity residual requires in_ch == out_ch * expansion"
    d = int(dilation)
    assert 0 < d < min(H, W)
    HW = H * W
    P = N * HW

    f32, bf16 = jnp.float32, jnp.bfloat16

    # Channel-major layout == NCHW: a free reshape, no transpose passes.
    x3 = x_nchw.astype(f32).reshape(N, c_in, HW)

    w1t = params["w1"].T.astype(bf16)                       # (C, c_in)
    w2t = params["w2"].reshape(9 * C, C).T.astype(bf16)     # (C, 9C), K = t*C + ci
    w3t = params["w3"].T.astype(bf16)                       # (c_out, C)
    g1 = jnp.reshape(params["g1"], (C, 1)).astype(f32)
    b1 = jnp.reshape(params["b1"], (C, 1)).astype(f32)
    g2 = jnp.reshape(params["g2"], (C, 1)).astype(f32)
    b2 = jnp.reshape(params["b2"], (C, 1)).astype(f32)
    g3 = jnp.reshape(params["g3"], (c_out, 1)).astype(f32)
    b3 = jnp.reshape(params["b3"], (c_out, 1)).astype(f32)

    # Tiny x-coordinate index vector (reused by all 9 taps); row conditions use
    # an in-kernel lane iota, so no vector int-div/mod is needed in the kernel.
    colid = jnp.tile(jnp.arange(W, dtype=jnp.int32), H).reshape(1, HW)

    vmem_limit = _vmem_limit_bytes()
    par = pltpu.CompilerParams(dimension_semantics=("parallel",),
                               vmem_limit_bytes=vmem_limit)

    def img_spec(ch):                    # one image per grid step, full dims
        return pl.BlockSpec((1, ch, HW), lambda n: (n, 0, 0))

    def const_spec(shape):               # small operand, resident across the grid
        nd = len(shape)
        return pl.BlockSpec(shape, lambda n: (0,) * nd)

    def stat_spec(ch):                   # per-image partial statistics
        return pl.BlockSpec((1, ch, 1), lambda n: (n, 0, 0))

    # ---- stage 1: conv1 (1x1) + BN1 partial sums, per image ------------------
    h1, s1p, q1p = pl.pallas_call(
        conv1_kernel,
        grid=(N,),
        in_specs=[img_spec(c_in), const_spec((C, c_in))],
        out_specs=[img_spec(C), stat_spec(C), stat_spec(C)],
        out_shape=[jax.ShapeDtypeStruct((N, C, HW), bf16),
                   jax.ShapeDtypeStruct((N, C, 1), f32),
                   jax.ShapeDtypeStruct((N, C, 1), f32)],
        compiler_params=par,
    )(x3, w1t)
    scale1, shift1 = _finalize_bn(jnp.sum(s1p, 0), jnp.sum(q1p, 0), g1, b1, P)

    # ---- stage 2: BN1+ReLU + 3x3 dilated conv (wide-K) + BN2 partial sums ----
    h2, s2p, q2p = pl.pallas_call(
        functools.partial(conv2_kernel, H=H, W=W, d=d),
        grid=(N,),
        in_specs=[img_spec(C), const_spec((1, HW)),
                  const_spec((C, 1)), const_spec((C, 1)),
                  const_spec((C, 9 * C))],
        out_specs=[img_spec(C), stat_spec(C), stat_spec(C)],
        out_shape=[jax.ShapeDtypeStruct((N, C, HW), bf16),
                   jax.ShapeDtypeStruct((N, C, 1), f32),
                   jax.ShapeDtypeStruct((N, C, 1), f32)],
        compiler_params=par,
    )(h1, colid, scale1, shift1, w2t)
    scale2, shift2 = _finalize_bn(jnp.sum(s2p, 0), jnp.sum(q2p, 0), g2, b2, P)

    # ---- stage 3: BN2+ReLU + conv3 (1x1) + BN3 partial sums ------------------
    h3, s3p, q3p = pl.pallas_call(
        conv3_kernel,
        grid=(N,),
        in_specs=[img_spec(C), const_spec((C, 1)), const_spec((C, 1)),
                  const_spec((c_out, C))],
        out_specs=[img_spec(c_out), stat_spec(c_out), stat_spec(c_out)],
        out_shape=[jax.ShapeDtypeStruct((N, c_out, HW), bf16),
                   jax.ShapeDtypeStruct((N, c_out, 1), f32),
                   jax.ShapeDtypeStruct((N, c_out, 1), f32)],
        compiler_params=par,
    )(h2, scale2, shift2, w3t)
    scale3, shift3 = _finalize_bn(jnp.sum(s3p, 0), jnp.sum(q3p, 0), g3, b3, P)

    # ---- stage 4: BN3 + identity residual + ReLU -----------------------------
    out3 = pl.pallas_call(
        bn3_residual_kernel,
        grid=(N,),
        in_specs=[img_spec(c_out), const_spec((c_out, 1)), const_spec((c_out, 1)),
                  img_spec(c_in)],
        out_specs=img_spec(c_out),
        out_shape=jax.ShapeDtypeStruct((N, c_out, HW), f32),
        compiler_params=par,
    )(h3, scale3, shift3, x3)

    # Channel-major (N, c_out, HW) is already NCHW up to a free reshape.
    return out3.reshape(N, c_out, H, W)


# ---------------------------------------------------------------------------
# Pure-JAX/XLA reference (PyTorch BottleBlock forward semantics)
# ---------------------------------------------------------------------------
def reference_forward(x_nchw, params, w2_hwio, dilation=1,
                      mirror_kernel_numerics=True):
    """mirror_kernel_numerics=True mirrors the kernel's bf16 MXU operands and
    bf16 inter-stage storage (f32 accumulation / BN math); False gives the
    full-f32 PyTorch-semantics forward."""
    d = dilation
    if mirror_kernel_numerics:
        cast = lambda a: a.astype(jnp.bfloat16)
        store = lambda a: a.astype(jnp.bfloat16).astype(jnp.float32)
    else:
        cast = lambda a: a.astype(jnp.float32)
        store = lambda a: a
    x = jnp.transpose(x_nchw, (0, 2, 3, 1)).astype(jnp.float32)

    def bn(h, g, b, relu):
        mu = h.mean(axis=(0, 1, 2), keepdims=True)
        var = ((h - mu) ** 2).mean(axis=(0, 1, 2), keepdims=True)   # biased
        y = (h - mu) * lax.rsqrt(var + _EPS) * g.reshape(1, 1, 1, -1) \
            + b.reshape(1, 1, 1, -1)
        return jnp.maximum(y, 0.0) if relu else y

    h = jnp.einsum("nhwc,cd->nhwd", cast(x), cast(params["w1"]),
                   preferred_element_type=jnp.float32)
    h = bn(store(h), params["g1"], params["b1"], True)
    h = lax.conv_general_dilated(
        cast(h), cast(w2_hwio), window_strides=(1, 1), padding=[(d, d), (d, d)],
        rhs_dilation=(d, d), dimension_numbers=("NHWC", "HWIO", "NHWC"),
        preferred_element_type=jnp.float32)
    h = bn(store(h), params["g2"], params["b2"], True)
    h = jnp.einsum("nhwc,cd->nhwd", cast(h), cast(params["w3"]),
                   preferred_element_type=jnp.float32)
    h = bn(store(h), params["g3"], params["b3"], False)
    out = jnp.maximum(h + x, 0.0)
    return jnp.transpose(out, (0, 3, 1, 2))


if __name__ == "__main__":
    # Small deterministic problem; in_ch = out_ch * expansion so the identity
    # residual (stride=1, downsample=None) is shape-compatible.
    N, H, W = 2, 16, 16
    out_ch = 8
    in_ch = out_ch * 4        # 32

    key = jax.random.PRNGKey(0)
    ks = jax.random.split(key, 10)

    x = jax.random.normal(ks[0], (N, in_ch, H, W), jnp.float32)

    w1 = 0.1 * jax.random.normal(ks[1], (in_ch, out_ch), jnp.float32)
    w2_hwio = 0.1 * jax.random.normal(ks[2], (3, 3, out_ch, out_ch), jnp.float32)
    w3 = 0.1 * jax.random.normal(ks[3], (out_ch, in_ch), jnp.float32)

    g1 = 1.0 + 0.1 * jax.random.normal(ks[4], (1, out_ch), jnp.float32)
    b1 = 0.1 * jax.random.normal(ks[5], (1, out_ch), jnp.float32)
    g2 = 1.0 + 0.1 * jax.random.normal(ks[6], (1, out_ch), jnp.float32)
    b2 = 0.1 * jax.random.normal(ks[7], (1, out_ch), jnp.float32)
    g3 = 1.0 + 0.1 * jax.random.normal(ks[8], (1, in_ch), jnp.float32)
    b3 = 0.1 * jax.random.normal(ks[9], (1, in_ch), jnp.float32)

    params = dict(
        w1=w1,
        w2=w2_hwio.reshape(9, out_ch, out_ch),   # tap order t = ky*3 + kx
        w3=w3,
        g1=g1, b1=b1, g2=g2, b2=b2, g3=g3, b3=b3,
    )

    fwd = jax.jit(bottle_block_forward, static_argnames=("dilation",))

    for d in (1, 2):          # exercise the plain and dilated 3x3 paths
        out = jax.block_until_ready(fwd(x, params, dilation=d))
        assert out.shape == (N, in_ch, H, W)
        ref = jax.block_until_ready(
            reference_forward(x, params, w2_hwio, d, mirror_kernel_numerics=True))
        err = float(jnp.max(jnp.abs(out - ref)))
        assert jnp.allclose(out, ref, rtol=5e-3, atol=5e-3), \
            f"dilation={d}: max abs err {err}"

    print("KERNEL_OK")
</pallas_src>

<mosaic_0001>
module attributes {stable_mosaic.version = 11 : i64} {
  func.func @conv1_kernel(%arg0: i32, %arg1: memref<1x32x256xf32, #tpu.memory_space<vmem>>, %arg2: memref<8x32xbf16, #tpu.memory_space<vmem>>, %arg3: memref<1x8x256xbf16, #tpu.memory_space<vmem>>, %arg4: memref<1x8x1xf32, #tpu.memory_space<vmem>>, %arg5: memref<1x8x1xf32, #tpu.memory_space<vmem>>) attributes {dimension_semantics = [#tpu.dimension_semantics<parallel>], iteration_bounds = array<i64: 2>, scalar_prefetch = 0 : i64, scratch_operands = 0 : i64, tpu.core_type = #tpu.core_type<tc>, window_params = [{transform_indices = @transform_0, window_bounds = array<i64: 1, 32, 256>}, {pipeline_mode = #tpu.pipeline_mode<synchronous>, transform_indices = @transform_1, window_bounds = array<i64: 8, 32>}, {transform_indices = @transform_2, window_bounds = array<i64: 1, 8, 256>}, {transform_indices = @transform_3, window_bounds = array<i64: 1, 8, 1>}, {transform_indices = @transform_4, window_bounds = array<i64: 1, 8, 1>}]} {
    %c0 = arith.constant 0 : index
    %c0_0 = arith.constant 0 : index
    %c0_1 = arith.constant 0 : index
    %0 = vector.load %arg1[%c0, %c0_0, %c0_1] : memref<1x32x256xf32, #tpu.memory_space<vmem>>, vector<1x32x256xf32>
    %1 = vector.shape_cast %0 : vector<1x32x256xf32> to vector<32x256xf32>
    %2 = arith.truncf %1 : vector<32x256xf32> to vector<32x256xbf16>
    %c0_2 = arith.constant 0 : index
    %c0_3 = arith.constant 0 : index
    %3 = vector.load %arg2[%c0_2, %c0_3] : memref<8x32xbf16, #tpu.memory_space<vmem>>, vector<8x32xbf16>
    %cst = arith.constant dense<0.000000e+00> : vector<8x256xf32>
    %4 = tpu.matmul %3, %2, %cst {dimension_numbers = #tpu.dot_dimension_numbers<[1], [0], [0], [1], [0, 0, 1, 1], [], []>} : vector<8x32xbf16>, vector<32x256xbf16>, vector<8x256xf32> -> vector<8x256xf32>
    %5 = arith.truncf %4 : vector<8x256xf32> to vector<8x256xbf16>
    %c0_4 = arith.constant 0 : index
    %c0_5 = arith.constant 0 : index
    %c0_6 = arith.constant 0 : index
    %6 = vector.load %arg3[%c0_4, %c0_5, %c0_6] : memref<1x8x256xbf16, #tpu.memory_space<vmem>>, vector<1x8x256xbf16>
    %7 = vector.shape_cast %6 : vector<1x8x256xbf16> to vector<8x256xbf16>
    %8 = vector.shape_cast %5 : vector<8x256xbf16> to vector<1x8x256xbf16>
    tpu.vector_store %arg3[%c0_4, %c0_5, %c0_6], %8 {strides = array<i32>} : memref<1x8x256xbf16, #tpu.memory_space<vmem>>, vector<1x8x256xbf16>,
    %9 = arith.extf %5 : vector<8x256xbf16> to vector<8x256xf32>
    %cst_7 = arith.constant dense<0.000000e+00> : vector<8xf32>
    %10 = vector.multi_reduction <add>, %9, %cst_7 [1] : vector<8x256xf32> to vector<8xf32>
    %11 = vector.shape_cast %10 : vector<8xf32> to vector<8x1xf32>
    %c0_8 = arith.constant 0 : index
    %c0_9 = arith.constant 0 : index
    %c0_10 = arith.constant 0 : index
    %12 = vector.load %arg4[%c0_8, %c0_9, %c0_10] : memref<1x8x1xf32, #tpu.memory_space<vmem>>, vector<1x8x1xf32>
    %13 = vector.shape_cast %12 : vector<1x8x1xf32> to vector<8x1xf32>
    %14 = vector.shape_cast %11 : vector<8x1xf32> to vector<1x8x1xf32>
    tpu.vector_store %arg4[%c0_8, %c0_9, %c0_10], %14 {strides = array<i32>} : memref<1x8x1xf32, #tpu.memory_space<vmem>>, vector<1x8x1xf32>,
    %15 = arith.mulf %9, %9 : vector<8x256xf32>
    %cst_11 = arith.constant dense<0.000000e+00> : vector<8xf32>
    %16 = vector.multi_reduction <add>, %15, %cst_11 [1] : vector<8x256xf32> to vector<8xf32>
    %17 = vector.shape_cast %16 : vector<8xf32> to vector<8x1xf32>
    %c0_12 = arith.constant 0 : index
    %c0_13 = arith.constant 0 : index
    %c0_14 = arith.constant 0 : index
    %18 = vector.load %arg5[%c0_12, %c0_13, %c0_14] : memref<1x8x1xf32, #tpu.memory_space<vmem>>, vector<1x8x1xf32>
    %19 = vector.shape_cast %18 : vector<1x8x1xf32> to vector<8x1xf32>
    %20 = vector.shape_cast %17 : vector<8x1xf32> to vector<1x8x1xf32>
    tpu.vector_store %arg5[%c0_12, %c0_13, %c0_14], %20 {strides = array<i32>} : memref<1x8x1xf32, #tpu.memory_space<vmem>>, vector<1x8x1xf32>,
    return
  }
  func.func @transform_0(%arg0: i32) -> (i32, i32, i32) {
    %c0_i32 = arith.constant 0 : i32
    %c0_i32_0 = arith.constant 0 : i32
    %c0_i32_1 = arith.constant 0 : i32
    return %arg0, %c0_i32, %c0_i32_0 : i32, i32, i32
  }
  func.func @transform_1(%arg0: i32) -> (i32, i32) {
    %c0_i32 = arith.constant 0 : i32
    %c0_i32_0 = arith.constant 0 : i32
    %c0_i32_1 = arith.constant 0 : i32
    return %c0_i32, %c0_i32_0 : i32, i32
  }
  func.func @transform_2(%arg0: i32) -> (i32, i32, i32) {
    %c0_i32 = arith.constant 0 : i32
    %c0_i32_0 = arith.constant 0 : i32
    %c0_i32_1 = arith.constant 0 : i32
    return %arg0, %c0_i32, %c0_i32_0 : i32, i32, i32
  }
  func.func @transform_3(%arg0: i32) -> (i32, i32, i32) {
    %c0_i32 = arith.constant 0 : i32
    %c0_i32_0 = arith.constant 0 : i32
    %c0_i32_1 = arith.constant 0 : i32
    return %arg0, %c0_i32, %c0_i32_0 : i32, i32, i32
  }
  func.func @transform_4(%arg0: i32) -> (i32, i32, i32) {
    %c0_i32 = arith.constant 0 : i32
    %c0_i32_0 = arith.constant 0 : i32
    %c0_i32_1 = arith.constant 0 : i32
    return %arg0, %c0_i32, %c0_i32_0 : i32, i32, i32
  }
}

module attributes {stable_mosaic.version = 11 : i64} {
  func.func @conv2_kernel(%arg0: i32, %arg1: memref<1x8x256xbf16, #tpu.memory_space<vmem>>, %arg2: memref<1x256xi32, #tpu.memory_space<vmem>>, %arg3: memref<8x1xf32, #tpu.memory_space<vmem>>, %arg4: memref<8x1xf32, #tpu.memory_space<vmem>>, %arg5: memref<8x72xbf16, #tpu.memory_space<vmem>>, %arg6: memref<1x8x256xbf16, #tpu.memory_space<vmem>>, %arg7: memref<1x8x1xf32, #tpu.memory_space<vmem>>, %arg8: memref<1x8x1xf32, #tpu.memory_space<vmem>>) attributes {dimension_semantics = [#tpu.dimension_semantics<parallel>], iteration_bounds = array<i64: 2>, scalar_prefetch = 0 : i64, scratch_operands = 0 : i64, tpu.core_type = #tpu.core_type<tc>, window_params = [{transform_indices = @transform_0, window_bounds = array<i64: 1, 8, 256>}, {pipeline_mode = #tpu.pipeline_mode<synchronous>, transform_indices = @transform_1, window_bounds = array<i64: 1, 256>}, {pipeline_mode = #tpu.pipeline_mode<synchronous>, transform_indices = @transform_2, window_bounds = array<i64: 8, 1>}, {pipeline_mode = #tpu.pipeline_mode<synchronous>, transform_indices = @transform_3, window_bounds = array<i64: 8, 1>}, {pipeline_mode = #tpu.pipeline_mode<synchronous>, transform_indices = @transform_4, window_bounds = array<i64: 8, 72>}, {transform_indices = @transform_5, window_bounds = array<i64: 1, 8, 256>}, {transform_indices = @transform_6, window_bounds = array<i64: 1, 8, 1>}, {transform_indices = @transform_7, window_bounds = array<i64: 1, 8, 1>}]} {
    %c0 = arith.constant 0 : index
    %c0_0 = arith.constant 0 : index
    %c0_1 = arith.constant 0 : index
    %0 = vector.load %arg1[%c0, %c0_0, %c0_1] : memref<1x8x256xbf16, #tpu.memory_space<vmem>>, vector<1x8x256xbf16>
    %1 = vector.shape_cast %0 : vector<1x8x256xbf16> to vector<8x256xbf16>
    %2 = arith.extf %1 : vector<8x256xbf16> to vector<8x256xf32>
    %c0_2 = arith.constant 0 : index
    %c0_3 = arith.constant 0 : index
    %3 = vector.load %arg3[%c0_2, %c0_3] : memref<8x1xf32, #tpu.memory_space<vmem>>, vector<8x1xf32>
    %4 = vector.broadcast %3 : vector<8x1xf32> to vector<8x256xf32>
    %5 = arith.mulf %2, %4 : vector<8x256xf32>
    %c0_4 = arith.constant 0 : index
    %c0_5 = arith.constant 0 : index
    %6 = vector.load %arg4[%c0_4, %c0_5] : memref<8x1xf32, #tpu.memory_space<vmem>>, vector<8x1xf32>
    %7 = vector.broadcast %6 : vector<8x1xf32> to vector<8x256xf32>
    %8 = arith.addf %5, %7 : vector<8x256xf32>
    %cst = arith.constant 0.000000e+00 : f32
    %9 = vector.broadcast %cst : f32 to vector<8x256xf32>
    %10 = arith.maximumf %8, %9 : vector<8x256xf32>
    %11 = tpu.iota {dimensions = array<i32: 1>} : vector<1x256xi32>
    %c0_6 = arith.constant 0 : index
    %c0_7 = arith.constant 0 : index
    %12 = vector.load %arg2[%c0_6, %c0_7] : memref<1x256xi32, #tpu.memory_space<vmem>>, vector<1x256xi32>
    %c17_i32 = arith.constant 17 : i32
    %13 = tpu.dynamic_rotate %10 by %c17_i32 dim 1 : vector<8x256xf32>, i32 -> vector<8x256xf32>
    %c16_i32 = arith.constant 16 : i32
    %14 = vector.broadcast %c16_i32 : i32 to vector<1x256xi32>
    %15 = arith.cmpi sge, %11, %14 : vector<1x256xi32>
    %c1_i32 = arith.constant 1 : i32
    %16 = vector.broadcast %c1_i32 : i32 to vector<1x256xi32>
    %17 = arith.cmpi sge, %12, %16 : vector<1x256xi32>
    %18 = arith.andi %15, %17 : vector<1x256xi1>
    %cst_8 = arith.constant 0.000000e+00 : f32
    %19 = vector.shape_cast %18 : vector<1x256xi1> to vector<1x256xi1>
    %20 = vector.broadcast %19 : vector<1x256xi1> to vector<8x256xi1>
    %21 = vector.broadcast %cst_8 : f32 to vector<8x256xf32>
    %22 = arith.select %20, %13, %21 : vector<8x256xi1>, vector<8x256xf32>
    %c16_i32_9 = arith.constant 16 : i32
    %23 = tpu.dynamic_rotate %10 by %c16_i32_9 dim 1 : vector<8x256xf32>, i32 -> vector<8x256xf32>
    %c16_i32_10 = arith.constant 16 : i32
    %24 = vector.broadcast %c16_i32_10 : i32 to vector<1x256xi32>
    %25 = arith.cmpi sge, %11, %24 : vector<1x256xi32>
    %cst_11 = arith.constant 0.000000e+00 : f32
    %26 = vector.shape_cast %25 : vector<1x256xi1> to vector<1x256xi1>
    %27 = vector.broadcast %26 : vector<1x256xi1> to vector<8x256xi1>
    %28 = vector.broadcast %cst_11 : f32 to vector<8x256xf32>
    %29 = arith.select %27, %23, %28 : vector<8x256xi1>, vector<8x256xf32>
    %c15_i32 = arith.constant 15 : i32
    %30 = tpu.dynamic_rotate %10 by %c15_i32 dim 1 : vector<8x256xf32>, i32 -> vector<8x256xf32>
    %c16_i32_12 = arith.constant 16 : i32
    %31 = vector.broadcast %c16_i32_12 : i32 to vector<1x256xi32>
    %32 = arith.cmpi sge, %11, %31 : vector<1x256xi32>
    %c15_i32_13 = arith.constant 15 : i32
    %33 = vector.broadcast %c15_i32_13 : i32 to vector<1x256xi32>
    %34 = arith.cmpi slt, %12, %33 : vector<1x256xi32>
    %35 = arith.andi %32, %34 : vector<1x256xi1>
    %cst_14 = arith.constant 0.000000e+00 : f32
    %36 = vector.shape_cast %35 : vector<1x256xi1> to vector<1x256xi1>
    %37 = vector.broadcast %36 : vector<1x256xi1> to vector<8x256xi1>
    %38 = vector.broadcast %cst_14 : f32 to vector<8x256xf32>
    %39 = arith.select %37, %30, %38 : vector<8x256xi1>, vector<8x256xf32>
    %c1_i32_15 = arith.constant 1 : i32
    %40 = tpu.dynamic_rotate %10 by %c1_i32_15 dim 1 : vector<8x256xf32>, i32 -> vector<8x256xf32>
    %c1_i32_16 = arith.constant 1 : i32
    %41 = vector.broadcast %c1_i32_16 : i32 to vector<1x256xi32>
    %42 = arith.cmpi sge, %12, %41 : vector<1x256xi32>
    %cst_17 = arith.constant 0.000000e+00 : f32
    %43 = vector.shape_cast %42 : vector<1x256xi1> to vector<1x256xi1>
    %44 = vector.broadcast %43 : vector<1x256xi1> to vector<8x256xi1>
    %45 = vector.broadcast %cst_17 : f32 to vector<8x256xf32>
    %46 = arith.select %44, %40, %45 : vector<8x256xi1>, vector<8x256xf32>
    %c255_i32 = arith.constant 255 : i32
    %47 = tpu.dynamic_rotate %10 by %c255_i32 dim 1 : vector<8x256xf32>, i32 -> vector<8x256xf32>
    %c15_i32_18 = arith.constant 15 : i32
    %48 = vector.broadcast %c15_i32_18 : i32 to vector<1x256xi32>
    %49 = arith.cmpi slt, %12, %48 : vector<1x256xi32>
    %cst_19 = arith.constant 0.000000e+00 : f32
    %50 = vector.shape_cast %49 : vector<1x256xi1> to vector<1x256xi1>
    %51 = vector.broadcast %50 : vector<1x256xi1> to vector<8x256xi1>
    %52 = vector.broadcast %cst_19 : f32 to vector<8x256xf32>
    %53 = arith.select %51, %47, %52 : vector<8x256xi1>, vector<8x256xf32>
    %c241_i32 = arith.constant 241 : i32
    %54 = tpu.dynamic_rotate %10 by %c241_i32 dim 1 : vector<8x256xf32>, i32 -> vector<8x256xf32>
    %c240_i32 = arith.constant 240 : i32
    %55 = vector.broadcast %c240_i32 : i32 to vector<1x256xi32>
    %56 = arith.cmpi slt, %11, %55 : vector<1x256xi32>
    %c1_i32_20 = arith.constant 1 : i32
    %57 = vector.broadcast %c1_i32_20 : i32 to vector<1x256xi32>
    %58 = arith.cmpi sge, %12, %57 : vector<1x256xi32>
    %59 = arith.andi %56, %58 : vector<1x256xi1>
    %cst_21 = arith.constant 0.000000e+00 : f32
    %60 = vector.shape_cast %59 : vector<1x256xi1> to vector<1x256xi1>
    %61 = vector.broadcast %60 : vector<1x256xi1> to vector<8x256xi1>
    %62 = vector.broadcast %cst_21 : f32 to vector<8x256xf32>
    %63 = arith.select %61, %54, %62 : vector<8x256xi1>, vector<8x256xf32>
    %c240_i32_22 = arith.constant 240 : i32
    %64 = tpu.dynamic_rotate %10 by %c240_i32_22 dim 1 : vector<8x256xf32>, i32 -> vector<8x256xf32>
    %c240_i32_23 = arith.constant 240 : i32
    %65 = vector.broadcast %c240_i32_23 : i32 to vector<1x256xi32>
    %66 = arith.cmpi slt, %11, %65 : vector<1x256xi32>
    %cst_24 = arith.constant 0.000000e+00 : f32
    %67 = vector.shape_cast %66 : vector<1x256xi1> to vector<1x256xi1>
    %68 = vector.broadcast %67 : vector<1x256xi1> to vector<8x256xi1>
    %69 = vector.broadcast %cst_24 : f32 to vector<8x256xf32>
    %70 = arith.select %68, %64, %69 : vector<8x256xi1>, vector<8x256xf32>
    %c239_i32 = arith.constant 239 : i32
    %71 = tpu.dynamic_rotate %10 by %c239_i32 dim 1 : vector<8x256xf32>, i32 -> vector<8x256xf32>
    %c240_i32_25 = arith.constant 240 : i32
    %72 = vector.broadcast %c240_i32_25 : i32 to vector<1x256xi32>
    %73 = arith.cmpi slt, %11, %72 : vector<1x256xi32>
    %c15_i32_26 = arith.constant 15 : i32
    %74 = vector.broadcast %c15_i32_26 : i32 to vector<1x256xi32>
    %75 = arith.cmpi slt, %12, %74 : vector<1x256xi32>
    %76 = arith.andi %73, %75 : vector<1x256xi1>
    %cst_27 = arith.constant 0.000000e+00 : f32
    %77 = vector.shape_cast %76 : vector<1x256xi1> to vector<1x256xi1>
    %78 = vector.broadcast %77 : vector<1x256xi1> to vector<8x256xi1>
    %79 = vector.broadcast %cst_27 : f32 to vector<8x256xf32>
    %80 = arith.select %78, %71, %79 : vector<8x256xi1>, vector<8x256xf32>
    %81 = tpu.concatenate %22, %29, %39, %46, %10, %53, %63, %70, %80 in 0 : vector<8x256xf32>, vector<8x256xf32>, vector<8x256xf32>, vector<8x256xf32>, vector<8x256xf32>, vector<8x256xf32>, vector<8x256xf32>, vector<8x256xf32>, vector<8x256xf32> -> vector<72x256xf32>
    %82 = arith.truncf %81 : vector<72x256xf32> to vector<72x256xbf16>
    %c0_28 = arith.constant 0 : index
    %c0_29 = arith.constant 0 : index
    %83 = vector.load %arg5[%c0_28, %c0_29] : memref<8x72xbf16, #tpu.memory_space<vmem>>, vector<8x72xbf16>
    %cst_30 = arith.constant dense<0.000000e+00> : vector<8x256xf32>
    %84 = tpu.matmul %83, %82, %cst_30 {dimension_numbers = #tpu.dot_dimension_numbers<[1], [0], [0], [1], [0, 0, 1, 1], [], []>} : vector<8x72xbf16>, vector<72x256xbf16>, vector<8x256xf32> -> vector<8x256xf32>
    %85 = arith.truncf %84 : vector<8x256xf32> to vector<8x256xbf16>
    %c0_31 = arith.constant 0 : index
    %c0_32 = arith.constant 0 : index
    %c0_33 = arith.constant 0 : index
    %86 = vector.load %arg6[%c0_31, %c0_32, %c0_33] : memref<1x8x256xbf16, #tpu.memory_space<vmem>>, vector<1x8x256xbf16>
    %87 = vector.shape_cast %86 : vector<1x8x256xbf16> to vector<8x256xbf16>
    %88 = vector.shape_cast %85 : vector<8x256xbf16> to vector<1x8x256xbf16>
    tpu.vector_store %arg6[%c0_31, %c0_32, %c0_33], %88 {strides = array<i32>} : memref<1x8x256xbf16, #tpu.memory_space<vmem>>, vector<1x8x256xbf16>,
    %89 = arith.extf %85 : vector<8x256xbf16> to vector<8x256xf32>
    %cst_34 = arith.constant dense<0.000000e+00> : vector<8xf32>
    %90 = vector.multi_reduction <add>, %89, %cst_34 [1] : vector<8x256xf32> to vector<8xf32>
    %91 = vector.shape_cast %90 : vector<8xf32> to vector<8x1xf32>
    %c0_35 = arith.constant 0 : index
    %c0_36 = arith.constant 0 : index
    %c0_37 = arith.constant 0 : index
    %92 = vector.load %arg7[%c0_35, %c0_36, %c0_37] : memref<1x8x1xf32, #tpu.memory_space<vmem>>, vector<1x8x1xf32>
    %93 = vector.shape_cast %92 : vector<1x8x1xf32> to vector<8x1xf32>
    %94 = vector.shape_cast %91 : vector<8x1xf32> to vector<1x8x1xf32>
    tpu.vector_store %arg7[%c0_35, %c0_36, %c0_37], %94 {strides = array<i32>} : memref<1x8x1xf32, #tpu.memory_space<vmem>>, vector<1x8x1xf32>,
    %95 = arith.mulf %89, %89 : vector<8x256xf32>
    %cst_38 = arith.constant dense<0.000000e+00> : vector<8xf32>
    %96 = vector.multi_reduction <add>, %95, %cst_38 [1] : vector<8x256xf32> to vector<8xf32>
    %97 = vector.shape_cast %96 : vector<8xf32> to vector<8x1xf32>
    %c0_39 = arith.constant 0 : index
    %c0_40 = arith.constant 0 : index
    %c0_41 = arith.constant 0 : index
    %98 = vector.load %arg8[%c0_39, %c0_40, %c0_41] : memref<1x8x1xf32, #tpu.memory_space<vmem>>, vector<1x8x1xf32>
    %99 = vector.shape_cast %98 : vector<1x8x1xf32> to vector<8x1xf32>
    %100 = vector.shape_cast %97 : vector<8x1xf32> to vector<1x8x1xf32>
    tpu.vector_store %arg8[%c0_39, %c0_40, %c0_41], %100 {strides = array<i32>} : memref<1x8x1xf32, #tpu.memory_space<vmem>>, vector<1x8x1xf32>,
    return
  }
  func.func @transform_0(%arg0: i32) -> (i32, i32, i32) {
    %c0_i32 = arith.constant 0 : i32
    %c0_i32_0 = arith.constant 0 : i32
    %c0_i32_1 = arith.constant 0 : i32
    return %arg0, %c0_i32, %c0_i32_0 : i32, i32, i32
  }
  func.func @transform_1(%arg0: i32) -> (i32, i32) {
    %c0_i32 = arith.constant 0 : i32
    %c0_i32_0 = arith.constant 0 : i32
    %c0_i32_1 = arith.constant 0 : i32
    return %c0_i32, %c0_i32_0 : i32, i32
  }
  func.func @transform_2(%arg0: i32) -> (i32, i32) {
    %c0_i32 = arith.constant 0 : i32
    %c0_i32_0 = arith.constant 0 : i32
    %c0_i32_1 = arith.constant 0 : i32
    return %c0_i32, %c0_i32_0 : i32, i32
  }
  func.func @transform_3(%arg0: i32) -> (i32, i32) {
    %c0_i32 = arith.constant 0 : i32
    %c0_i32_0 = arith.constant 0 : i32
    %c0_i32_1 = arith.constant 0 : i32
    return %c0_i32, %c0_i32_0 : i32, i32
  }
  func.func @transform_4(%arg0: i32) -> (i32, i32) {
    %c0_i32 = arith.constant 0 : i32
    %c0_i32_0 = arith.constant 0 : i32
    %c0_i32_1 = arith.constant 0 : i32
    return %c0_i32, %c0_i32_0 : i32, i32
  }
  func.func @transform_5(%arg0: i32) -> (i32, i32, i32) {
    %c0_i32 = arith.constant 0 : i32
    %c0_i32_0 = arith.constant 0 : i32
    %c0_i32_1 = arith.constant 0 : i32
    return %arg0, %c0_i32, %c0_i32_0 : i32, i32, i32
  }
  func.func @transform_6(%arg0: i32) -> (i32, i32, i32) {
    %c0_i32 = arith.constant 0 : i32
    %c0_i32_0 = arith.constant 0 : i32
    %c0_i32_1 = arith.constant 0 : i32
    return %arg0, %c0_i32, %c0_i32_0 : i32, i32, i32
  }
  func.func @transform_7(%arg0: i32) -> (i32, i32, i32) {
    %c0_i32 = arith.constant 0 : i32
    %c0_i32_0 = arith.constant 0 : i32
    %c0_i32_1 = arith.constant 0 : i32
    return %arg0, %c0_i32, %c0_i32_0 : i32, i32, i32
  }
}

module attributes {stable_mosaic.version = 11 : i64} {
  func.func @conv3_kernel(%arg0: i32, %arg1: memref<1x8x256xbf16, #tpu.memory_space<vmem>>, %arg2: memref<8x1xf32, #tpu.memory_space<vmem>>, %arg3: memref<8x1xf32, #tpu.memory_space<vmem>>, %arg4: memref<32x8xbf16, #tpu.memory_space<vmem>>, %arg5: memref<1x32x256xbf16, #tpu.memory_space<vmem>>, %arg6: memref<1x32x1xf32, #tpu.memory_space<vmem>>, %arg7: memref<1x32x1xf32, #tpu.memory_space<vmem>>) attributes {dimension_semantics = [#tpu.dimension_semantics<parallel>], iteration_bounds = array<i64: 2>, scalar_prefetch = 0 : i64, scratch_operands = 0 : i64, tpu.core_type = #tpu.core_type<tc>, window_params = [{transform_indices = @transform_0, window_bounds = array<i64: 1, 8, 256>}, {pipeline_mode = #tpu.pipeline_mode<synchronous>, transform_indices = @transform_1, window_bounds = array<i64: 8, 1>}, {pipeline_mode = #tpu.pipeline_mode<synchronous>, transform_indices = @transform_2, window_bounds = array<i64: 8, 1>}, {pipeline_mode = #tpu.pipeline_mode<synchronous>, transform_indices = @transform_3, window_bounds = array<i64: 32, 8>}, {transform_indices = @transform_4, window_bounds = array<i64: 1, 32, 256>}, {transform_indices = @transform_5, window_bounds = array<i64: 1, 32, 1>}, {transform_indices = @transform_6, window_bounds = array<i64: 1, 32, 1>}]} {
    %c0 = arith.constant 0 : index
    %c0_0 = arith.constant 0 : index
    %c0_1 = arith.constant 0 : index
    %0 = vector.load %arg1[%c0, %c0_0, %c0_1] : memref<1x8x256xbf16, #tpu.memory_space<vmem>>, vector<1x8x256xbf16>
    %1 = vector.shape_cast %0 : vector<1x8x256xbf16> to vector<8x256xbf16>
    %2 = arith.extf %1 : vector<8x256xbf16> to vector<8x256xf32>
    %c0_2 = arith.constant 0 : index
    %c0_3 = arith.constant 0 : index
    %3 = vector.load %arg2[%c0_2, %c0_3] : memref<8x1xf32, #tpu.memory_space<vmem>>, vector<8x1xf32>
    %4 = vector.broadcast %3 : vector<8x1xf32> to vector<8x256xf32>
    %5 = arith.mulf %2, %4 : vector<8x256xf32>
    %c0_4 = arith.constant 0 : index
    %c0_5 = arith.constant 0 : index
    %6 = vector.load %arg3[%c0_4, %c0_5] : memref<8x1xf32, #tpu.memory_space<vmem>>, vector<8x1xf32>
    %7 = vector.broadcast %6 : vector<8x1xf32> to vector<8x256xf32>
    %8 = arith.addf %5, %7 : vector<8x256xf32>
    %cst = arith.constant 0.000000e+00 : f32
    %9 = vector.broadcast %cst : f32 to vector<8x256xf32>
    %10 = arith.maximumf %8, %9 : vector<8x256xf32>
    %c0_6 = arith.constant 0 : index
    %c0_7 = arith.constant 0 : index
    %11 = vector.load %arg4[%c0_6, %c0_7] : memref<32x8xbf16, #tpu.memory_space<vmem>>, vector<32x8xbf16>
    %12 = arith.truncf %10 : vector<8x256xf32> to vector<8x256xbf16>
    %cst_8 = arith.constant dense<0.000000e+00> : vector<32x256xf32>
    %13 = tpu.matmul %11, %12, %cst_8 {dimension_numbers = #tpu.dot_dimension_numbers<[1], [0], [0], [1], [0, 0, 1, 1], [], []>} : vector<32x8xbf16>, vector<8x256xbf16>, vector<32x256xf32> -> vector<32x256xf32>
    %14 = arith.truncf %13 : vector<32x256xf32> to vector<32x256xbf16>
    %c0_9 = arith.constant 0 : index
    %c0_10 = arith.constant 0 : index
    %c0_11 = arith.constant 0 : index
    %15 = vector.load %arg5[%c0_9, %c0_10, %c0_11] : memref<1x32x256xbf16, #tpu.memory_space<vmem>>, vector<1x32x256xbf16>
    %16 = vector.shape_cast %15 : vector<1x32x256xbf16> to vector<32x256xbf16>
    %17 = vector.shape_cast %14 : vector<32x256xbf16> to vector<1x32x256xbf16>
    tpu.vector_store %arg5[%c0_9, %c0_10, %c0_11], %17 {strides = array<i32>} : memref<1x32x256xbf16, #tpu.memory_space<vmem>>, vector<1x32x256xbf16>,
    %18 = arith.extf %14 : vector<32x256xbf16> to vector<32x256xf32>
    %cst_12 = arith.constant dense<0.000000e+00> : vector<32xf32>
    %19 = vector.multi_reduction <add>, %18, %cst_12 [1] : vector<32x256xf32> to vector<32xf32>
    %20 = vector.shape_cast %19 : vector<32xf32> to vector<32x1xf32>
    %c0_13 = arith.constant 0 : index
    %c0_14 = arith.constant 0 : index
    %c0_15 = arith.constant 0 : index
    %21 = vector.load %arg6[%c0_13, %c0_14, %c0_15] : memref<1x32x1xf32, #tpu.memory_space<vmem>>, vector<1x32x1xf32>
    %22 = vector.shape_cast %21 : vector<1x32x1xf32> to vector<32x1xf32>
    %23 = vector.shape_cast %20 : vector<32x1xf32> to vector<1x32x1xf32>
    tpu.vector_store %arg6[%c0_13, %c0_14, %c0_15], %23 {strides = array<i32>} : memref<1x32x1xf32, #tpu.memory_space<vmem>>, vector<1x32x1xf32>,
    %24 = arith.mulf %18, %18 : vector<32x256xf32>
    %cst_16 = arith.constant dense<0.000000e+00> : vector<32xf32>
    %25 = vector.multi_reduction <add>, %24, %cst_16 [1] : vector<32x256xf32> to vector<32xf32>
    %26 = vector.shape_cast %25 : vector<32xf32> to vector<32x1xf32>
    %c0_17 = arith.constant 0 : index
    %c0_18 = arith.constant 0 : index
    %c0_19 = arith.constant 0 : index
    %27 = vector.load %arg7[%c0_17, %c0_18, %c0_19] : memref<1x32x1xf32, #tpu.memory_space<vmem>>, vector<1x32x1xf32>
    %28 = vector.shape_cast %27 : vector<1x32x1xf32> to vector<32x1xf32>
    %29 = vector.shape_cast %26 : vector<32x1xf32> to vector<1x32x1xf32>
    tpu.vector_store %arg7[%c0_17, %c0_18, %c0_19], %29 {strides = array<i32>} : memref<1x32x1xf32, #tpu.memory_space<vmem>>, vector<1x32x1xf32>,
    return
  }
  func.func @transform_0(%arg0: i32) -> (i32, i32, i32) {
    %c0_i32 = arith.constant 0 : i32
    %c0_i32_0 = arith.constant 0 : i32
    %c0_i32_1 = arith.constant 0 : i32
    return %arg0, %c0_i32, %c0_i32_0 : i32, i32, i32
  }
  func.func @transform_1(%arg0: i32) -> (i32, i32) {
    %c0_i32 = arith.constant 0 : i32
    %c0_i32_0 = arith.constant 0 : i32
    %c0_i32_1 = arith.constant 0 : i32
    return %c0_i32, %c0_i32_0 : i32, i32
  }
  func.func @transform_2(%arg0: i32) -> (i32, i32) {
    %c0_i32 = arith.constant 0 : i32
    %c0_i32_0 = arith.constant 0 : i32
    %c0_i32_1 = arith.constant 0 : i32
    return %c0_i32, %c0_i32_0 : i32, i32
  }
  func.func @transform_3(%arg0: i32) -> (i32, i32) {
    %c0_i32 = arith.constant 0 : i32
    %c0_i32_0 = arith.constant 0 : i32
    %c0_i32_1 = arith.constant 0 : i32
    return %c0_i32, %c0_i32_0 : i32, i32
  }
  func.func @transform_4(%arg0: i32) -> (i32, i32, i32) {
    %c0_i32 = arith.constant 0 : i32
    %c0_i32_0 = arith.constant 0 : i32
    %c0_i32_1 = arith.constant 0 : i32
    return %arg0, %c0_i32, %c0_i32_0 : i32, i32, i32
  }
  func.func @transform_5(%arg0: i32) -> (i32, i32, i32) {
    %c0_i32 = arith.constant 0 : i32
    %c0_i32_0 = arith.constant 0 : i32
    %c0_i32_1 = arith.constant 0 : i32
    return %arg0, %c0_i32, %c0_i32_0 : i32, i32, i32
  }
  func.func @transform_6(%arg0: i32) -> (i32, i32, i32) {
    %c0_i32 = arith.constant 0 : i32
    %c0_i32_0 = arith.constant 0 : i32
    %c0_i32_1 = arith.constant 0 : i32
    return %arg0, %c0_i32, %c0_i32_0 : i32, i32, i32
  }
}

module attributes {stable_mosaic.version = 11 : i64} {
  func.func @bn3_residual_kernel(%arg0: i32, %arg1: memref<1x32x256xbf16, #tpu.memory_space<vmem>>, %arg2: memref<32x1xf32, #tpu.memory_space<vmem>>, %arg3: memref<32x1xf32, #tpu.memory_space<vmem>>, %arg4: memref<1x32x256xf32, #tpu.memory_space<vmem>>, %arg5: memref<1x32x256xf32, #tpu.memory_space<vmem>>) attributes {dimension_semantics = [#tpu.dimension_semantics<parallel>], iteration_bounds = array<i64: 2>, scalar_prefetch = 0 : i64, scratch_operands = 0 : i64, tpu.core_type = #tpu.core_type<tc>, window_params = [{transform_indices = @transform_0, window_bounds = array<i64: 1, 32, 256>}, {pipeline_mode = #tpu.pipeline_mode<synchronous>, transform_indices = @transform_1, window_bounds = array<i64: 32, 1>}, {pipeline_mode = #tpu.pipeline_mode<synchronous>, transform_indices = @transform_2, window_bounds = array<i64: 32, 1>}, {transform_indices = @transform_3, window_bounds = array<i64: 1, 32, 256>}, {transform_indices = @transform_4, window_bounds = array<i64: 1, 32, 256>}]} {
    %c0 = arith.constant 0 : index
    %c0_0 = arith.constant 0 : index
    %c0_1 = arith.constant 0 : index
    %0 = vector.load %arg1[%c0, %c0_0, %c0_1] : memref<1x32x256xbf16, #tpu.memory_space<vmem>>, vector<1x32x256xbf16>
    %1 = vector.shape_cast %0 : vector<1x32x256xbf16> to vector<32x256xbf16>
    %2 = arith.extf %1 : vector<32x256xbf16> to vector<32x256xf32>
    %c0_2 = arith.constant 0 : index
    %c0_3 = arith.constant 0 : index
    %3 = vector.load %arg2[%c0_2, %c0_3] : memref<32x1xf32, #tpu.memory_space<vmem>>, vector<32x1xf32>
    %4 = vector.broadcast %3 : vector<32x1xf32> to vector<32x256xf32>
    %5 = arith.mulf %2, %4 : vector<32x256xf32>
    %c0_4 = arith.constant 0 : index
    %c0_5 = arith.constant 0 : index
    %6 = vector.load %arg3[%c0_4, %c0_5] : memref<32x1xf32, #tpu.memory_space<vmem>>, vector<32x1xf32>
    %7 = vector.broadcast %6 : vector<32x1xf32> to vector<32x256xf32>
    %8 = arith.addf %5, %7 : vector<32x256xf32>
    %c0_6 = arith.constant 0 : index
    %c0_7 = arith.constant 0 : index
    %c0_8 = arith.constant 0 : index
    %9 = vector.load %arg4[%c0_6, %c0_7, %c0_8] : memref<1x32x256xf32, #tpu.memory_space<vmem>>, vector<1x32x256xf32>
    %10 = vector.shape_cast %9 : vector<1x32x256xf32> to vector<32x256xf32>
    %11 = arith.addf %8, %10 : vector<32x256xf32>
    %cst = arith.constant 0.000000e+00 : f32
    %12 = vector.broadcast %cst : f32 to vector<32x256xf32>
    %13 = arith.maximumf %11, %12 : vector<32x256xf32>
    %c0_9 = arith.constant 0 : index
    %c0_10 = arith.constant 0 : index
    %c0_11 = arith.constant 0 : index
    %14 = vector.load %arg5[%c0_9, %c0_10, %c0_11] : memref<1x32x256xf32, #tpu.memory_space<vmem>>, vector<1x32x256xf32>
    %15 = vector.shape_cast %14 : vector<1x32x256xf32> to vector<32x256xf32>
    %16 = vector.shape_cast %13 : vector<32x256xf32> to vector<1x32x256xf32>
    tpu.vector_store %arg5[%c0_9, %c0_10, %c0_11], %16 {strides = array<i32>} : memref<1x32x256xf32, #tpu.memory_space<vmem>>, vector<1x32x256xf32>,
    return
  }
  func.func @transform_0(%arg0: i32) -> (i32, i32, i32) {
    %c0_i32 = arith.constant 0 : i32
    %c0_i32_0 = arith.constant 0 : i32
    %c0_i32_1 = arith.constant 0 : i32
    return %arg0, %c0_i32, %c0_i32_0 : i32, i32, i32
  }
  func.func @transform_1(%arg0: i32) -> (i32, i32) {
    %c0_i32 = arith.constant 0 : i32
    %c0_i32_0 = arith.constant 0 : i32
    %c0_i32_1 = arith.constant 0 : i32
    return %c0_i32, %c0_i32_0 : i32, i32
  }
  func.func @transform_2(%arg0: i32) -> (i32, i32) {
    %c0_i32 = arith.constant 0 : i32
    %c0_i32_0 = arith.constant 0 : i32
    %c0_i32_1 = arith.constant 0 : i32
    return %c0_i32, %c0_i32_0 : i32, i32
  }
  func.func @transform_3(%arg0: i32) -> (i32, i32, i32) {
    %c0_i32 = arith.constant 0 : i32
    %c0_i32_0 = arith.constant 0 : i32
    %c0_i32_1 = arith.constant 0 : i32
    return %arg0, %c0_i32, %c0_i32_0 : i32, i32, i32
  }
  func.func @transform_4(%arg0: i32) -> (i32, i32, i32) {
    %c0_i32 = arith.constant 0 : i32
    %c0_i32_0 = arith.constant 0 : i32
    %c0_i32_1 = arith.constant 0 : i32
    return %arg0, %c0_i32, %c0_i32_0 : i32, i32, i32
  }
}

</mosaic_0001>

<bundles_post_ra>
// kernel: tile.9
= control target key start
LH: loop header
LB: loop body
LE: loop exit
PB: predicated region body
PF: predicated region fallthrough
CT: control target
= control target key end

     0   :  { %s7_s6 = smov 3  ;;  %s21_s9 = smov 3  ;;  %vm4_vm0 = vcmask 130048   ;;  %vm11_vm1 = vcmask 1048448   ;;  %vm18_vm2 = vcmask 917248   ;;  %vm25_vm3 = vcmask 786048   ;;  %s128_s0 = inlined_call_operand.vmem [shape: s32[16,16], index: 0, kind: input, shape index: {}]   ;;  %s129_s1 = inlined_call_operand.vmem [shape: s32[1,256], index: 1, kind: output, shape index: {}]  }
   0x1   :  { %v66_v0 = vld [vmem:[%s128_s0 + $0x7] ss:$8 sm:%s7_s6]   ;;  %s81_s10 = smov 112   ;;  %v68_v1 = vld [vmem:[%s128_s0 + $0x5] ss:$8 sm:%s21_s9]   ;;  %s14_s13 = smov 3 }
   0x2   :  { %9 = vrot.lane.b32.xlu0 %v66_v0, %s81_s10  ;;  %s82_s14 = smov 80   ;;  %v67_v2 = vld [vmem:[%s128_s0 + $0x6] ss:$8 sm:%s14_s13]   ;;  %s28_s17 = smov 3  ;;  %vm32_vm4 = vcmask 654848   ;;  %vm39_vm5 = vcmask 523648  }
   0x3   :  { %23 = vrot.lane.b32.xlu1 %v68_v1, %s82_s14  ;;  %v69_v3 = vld [vmem:[%s128_s0 + $0x4] ss:$8 sm:%s28_s17]   ;;  %s35_s20 = smov 3  ;;  %s42_s21 = smov 3  ;;  %vm46_vm6 = vcmask 392448   ;;  %vm53_vm7 = vcmask 261248  }
   0x4   :  { %s83_s22 = smov 96   ;;  %s84_s23 = smov 64   ;;  %v70_v4 = vld [vmem:[%s128_s0 + $0x3] ss:$8 sm:%s35_s20]   ;;  %v71_v5 = vld [vmem:[%s128_s0 + $0x2] ss:$8 sm:%s42_s21]  }
   0x5   :  { %s2_s26 = smov 3  ;;  %s49_s29 = smov 3 }
   0x6   :  { %16 = vrot.lane.b32.xlu0 %v67_v2, %s83_s22  ;;  %v3_v6 = vld [vmem:[%s128_s0] ss:$8 sm:%s2_s26]   ;;  %s85_s3 = smov 48   ;;  %s86_s4 = smov 32  }
   0x7   :  { %30 = vrot.lane.b32.xlu1 %v69_v3, %s84_s23  ;;  %5 = vst.msk [vmem:[#allocation0] ss:$8 sm:$0x3] %vm4_vm0, %v3_v6   ;;  %v72_v7 = vld [vmem:[%s128_s0 + $0x1] ss:$8 sm:%s49_s29]   ;;  %s87_s0 = smov 16  }
   0xa   :  { %37 = vrot.lane.b32.xlu0 %v70_v4, %s85_s3 }
   0xb   :  { %44 = vrot.lane.b32.xlu1 %v71_v5, %s86_s4 }
   0xe   :  { %51 = vrot.lane.b32.xlu0 %v72_v7, %s87_s0 }
  0x74   :  { %v10_v8 = vpop.permute.xlu0 %9  }
  0x75   :  { %12 = vst.msk [vmem:[#allocation0] ss:$8 sm:$0x3] %vm11_vm1, %v10_v8   ;;  %v24_v9 = vpop.permute.xlu1 %23  }
  0x78   :  { %v17_v10 = vpop.permute.xlu0 %16  }
  0x79   :  { %19 = vst.msk [vmem:[#allocation0] ss:$8 sm:$0x3] %vm18_vm2, %v17_v10   ;;  %v31_v11 = vpop.permute.xlu1 %30  }
  0x7a   :  { %26 = vst.msk [vmem:[#allocation0] ss:$8 sm:$0x3] %vm25_vm3, %v24_v9  }
  0x7b   :  { %33 = vst.msk [vmem:[#allocation0] ss:$8 sm:$0x3] %vm32_vm4, %v31_v11  }
  0x7c   :  { %v38_v12 = vpop.permute.xlu0 %37  }
  0x7d   :  { %40 = vst.msk [vmem:[#allocation0] ss:$8 sm:$0x3] %vm39_vm5, %v38_v12   ;;  %v45_v13 = vpop.permute.xlu1 %44  }
  0x7e   :  { %47 = vst.msk [vmem:[#allocation0] ss:$8 sm:$0x3] %vm46_vm6, %v45_v13  }
  0x80   :  { %v52_v14 = vpop.permute.xlu0 %51  }
  0x81   :  { %54 = vst.msk [vmem:[#allocation0] ss:$8 sm:$0x3] %vm53_vm7, %v52_v14  }
  0x88   :  { %v58_v15 = vld [vmem:[#allocation0] sm:$0x1]  ;;  %v62_v16 = vld [vmem:[#allocation0 + $0x8] sm:$0x1] }
  0x89   :  { %60 = vst [vmem:[%s129_s1] sm:$0x1] %v58_v15  ;;  %73 = vst [vmem:[%s129_s1 + $0x1] sm:$0x1] %v62_v16 }

// kernel: bottle_block_forward.7
= control target key start
LH: loop header
LB: loop body
LE: loop exit
PB: predicated region body
PF: predicated region fallthrough
CT: control target
= control target key end

     0   :  { %s454_s15 = smov 0   ;;  %s526_s0 = inlined_call_operand.vmem [shape: bf16[2,32,256], index: 0, kind: input, shape index: {}]   ;;  %s527_s1 = inlined_call_operand.vmem [shape: f32[32,1], index: 1, kind: input, shape index: {}]   ;;  %s528_s2 = inlined_call_operand.vmem [shape: f32[32,1], index: 2, kind: input, shape index: {}]   ;;  %s529_s3 = inlined_call_operand.vmem [shape: f32[2,32,256], index: 3, kind: input, shape index: {}]   ;;  %s530_s4 = inlined_call_operand.vmem [shape: f32[2,32,256], index: 4, kind: output, shape index: {}]  }
   0x1 LB: > { %s393_s16 = sadd.s32 4294967295, %s426_s15   ;;  %p397_p0 = scmp.ge.s32.totalorder %s426_s15, 1  ;;  %s426_s15 = sphi %s454_s15, %s14_s15  }
   0x2   : > { %p172_p1 = scmp.lt.s32.totalorder %s426_s15, 3 }
   0x4   : > { %p173_p2 = pnand %p397_p0, %p172_p1 }
   0x5   : > { %v232_v0 = vld [vmem:[%s527_s1 + $0x10] sm:$0xff] (!%p173_p2)  ;;  %v230_v1 = vld [vmem:[%s527_s1] sm:$0xff] (!%p173_p2)  ;;  %v428_v2 = vmov (!%p173_p2), 0   ;;  %v233_v3 = vld [vmem:[%s527_s1 + $0x18] sm:$0xff] (!%p173_p2)  ;;  %p203_p3 = scmp.lt.s32.totalorder (!%p173_p2), %s393_s16, 1 }
   0x6   : > { %176 = sbr.rel (%p173_p2) target bundleno = 156 (0x9c), region = 36  ;;  %419 = vset.pattern.permute.xlu1 (!%p173_p2), %v428_v2  ;;  %418 = vset.pattern.permute.xlu0 (!%p173_p2), %v428_v2  ;;  %v231_v4 = vld [vmem:[%s527_s1 + $0x8] sm:$0xff] (!%p173_p2)  ;;  %v262_v6 = vld [vmem:[%s528_s2] sm:$0xff] (!%p173_p2)  ;;  %v265_v7 = vld [vmem:[%s528_s2 + $0x18] sm:$0xff] (!%p173_p2) }
   0x7   : > { %246 = vperm.xlu1 (!%p173_p2), %419, %v232_v0   ;;  %236 = vperm.xlu0 (!%p173_p2), %418, %v230_v1   ;;  %v263_v5 = vld [vmem:[%s528_s2 + $0x8] sm:$0xff] (!%p173_p2)  ;;  %v264_v8 = vld [vmem:[%s528_s2 + $0x10] sm:$0xff] (!%p173_p2) }
   0xb   : > { %251 = vperm.xlu1 (!%p173_p2), %419, %v233_v3   ;;  %241 = vperm.xlu0 (!%p173_p2), %418, %v231_v4  }
   0xd   : > { %s532_s16 = smov (!%p203_p3, %s393_s16), 1 }
   0xe   : > { %s406_s7 = sshll.u32 %s532_s16, 5  ;;  %s407_s11 = sshll.u32 %s532_s16, 6 }
   0xf   : > { %273 = vperm.xlu1 %419, %v263_v5   ;;  %268 = vperm.xlu0 %418, %v262_v6   ;;  %s207_s10 = scalar_lea.vmem %s526_s0, %s406_s7  ;;  %s498_s14 = scalar_lea.vmem %s529_s3, %s407_s11 }
  0x10   : > { %v218_v11 = vld [vmem:[%s207_s10] sm:$0xff]  ;;  %v219_v12 = vld [vmem:[%s207_s10 + $0x8] sm:$0xff]  ;;  %v220_v19 = vld [vmem:[%s207_s10 + $0x10] sm:$0xff]  ;;  %s509_s19 = scalar_lea.vmem %s530_s4, %s407_s11 }
  0x11   : > { %v222_v13 = vunpack.c.l.bf16 %v218_v11  ;;  %v223_v14 = vunpack.c.h.bf16 %v218_v11  ;;  %v224_v15 = vunpack.c.l.bf16 %v219_v12  ;;  %v225_v16 = vunpack.c.h.bf16 %v219_v12  ;;  %v221_v20 = vld [vmem:[%s207_s10 + $0x18] sm:$0xff]  ;;  %v296_v25 = vld [vmem:[%s498_s14 + $0x10] sm:$0xff]  ;;  %v294_v33 = vld [vmem:[%s498_s14] sm:$0xff] }
  0x12   : > { %v226_v26 = vunpack.c.l.bf16 %v220_v19  ;;  %v227_v27 = vunpack.c.h.bf16 %v220_v19  ;;  %v228_v28 = vunpack.c.l.bf16 %v221_v20  ;;  %v229_v29 = vunpack.c.h.bf16 %v221_v20  ;;  %v297_v31 = vld [vmem:[%s498_s14 + $0x18] sm:$0xff]  ;;  %v295_v34 = vld [vmem:[%s498_s14 + $0x8] sm:$0xff]  ;;  %v300_v48 = vld [vmem:[%s498_s14 + $0x30] sm:$0xff] }
  0x13   : > { %283 = vperm.xlu1 %419, %v265_v7   ;;  %278 = vperm.xlu0 %418, %v264_v8   ;;  %v301_v49 = vld [vmem:[%s498_s14 + $0x38] sm:$0xff]  ;;  %v298_v55 = vld [vmem:[%s498_s14 + $0x20] sm:$0xff]  ;;  %v299_v56 = vld [vmem:[%s498_s14 + $0x28] sm:$0xff] }
  0x86   : > { %v247_v9 = vpop.permute.xlu1 %246  ;;  %v237_v10 = vpop.permute.xlu0 %236 }
  0x87   : > { %v254_v21 = vmul.f32 %v237_v10, %v222_v13  ;;  %v255_v22 = vmul.f32 %v237_v10, %v223_v14  ;;  %v258_v43 = vmul.f32 %v247_v9, %v226_v26  ;;  %v259_v44 = vmul.f32 %v247_v9, %v227_v27 }
  0x8a   : > { %v252_v17 = vpop.permute.xlu1 %251  ;;  %v242_v18 = vpop.permute.xlu0 %241 }
  0x8b   : > { %v256_v23 = vmul.f32 %v242_v18, %v224_v15  ;;  %v257_v24 = vmul.f32 %v242_v18, %v225_v16  ;;  %v260_v45 = vmul.f32 %v252_v17, %v228_v28  ;;  %v261_v46 = vmul.f32 %v252_v17, %v229_v29 }
  0x8e   : > { %v274_v30 = vpop.permute.xlu1 %273  ;;  %v269_v32 = vpop.permute.xlu0 %268 }
  0x8f   : > { %v288_v35 = vadd.f32 %v274_v30, %v256_v23  ;;  %v289_v36 = vadd.f32 %v274_v30, %v257_v24  ;;  %v286_v37 = vadd.f32 %v269_v32, %v254_v21  ;;  %v287_v38 = vadd.f32 %v269_v32, %v255_v22 }
  0x91   : > { %v304_v39 = vadd.f32 %v296_v25, %v288_v35  ;;  %v305_v40 = vadd.f32 %v297_v31, %v289_v36  ;;  %v302_v41 = vadd.f32 %v294_v33, %v286_v37  ;;  %v303_v42 = vadd.f32 %v295_v34, %v287_v38 }
  0x92   : > { %v284_v47 = vpop.permute.xlu1 %283  ;;  %v279_v50 = vpop.permute.xlu0 %278 }
  0x93   : > { %v312_v51 = vmax.f32 %v304_v39, 0.0  ;;  %v313_v52 = vmax.f32 %v305_v40, 0.0  ;;  %v310_v53 = vmax.f32 %v302_v41, 0.0  ;;  %v311_v54 = vmax.f32 %v303_v42, 0.0 }
  0x94   : > { %v292_v57 = vadd.f32 %v284_v47, %v260_v45  ;;  %v293_v58 = vadd.f32 %v284_v47, %v261_v46  ;;  %v290_v59 = vadd.f32 %v279_v50, %v258_v43  ;;  %v291_v60 = vadd.f32 %v279_v50, %v259_v44 }
  0x95   : > { %320 = vst [vmem:[%s509_s19 + $0x10] sm:$0xff] %v312_v51  ;;  %321 = vst [vmem:[%s509_s19 + $0x18] sm:$0xff] %v313_v52 }
  0x96   : > { %318 = vst [vmem:[%s509_s19] sm:$0xff] %v310_v53  ;;  %319 = vst [vmem:[%s509_s19 + $0x8] sm:$0xff] %v311_v54  ;;  %v308_v61 = vadd.f32 %v300_v48, %v292_v57  ;;  %v309_v62 = vadd.f32 %v301_v49, %v293_v58  ;;  %v306_v63 = vadd.f32 %v298_v55, %v290_v59 }
  0x97   : > { %v307_v0 = vadd.f32 %v299_v56, %v291_v60 }
  0x98   : > { %v316_v1 = vmax.f32 %v308_v61, 0.0  ;;  %v317_v2 = vmax.f32 %v309_v62, 0.0  ;;  %v314_v3 = vmax.f32 %v306_v63, 0.0 }
  0x99   : > { %v315_v4 = vmax.f32 %v307_v0, 0.0 }
  0x9a   : > { %324 = vst [vmem:[%s509_s19 + $0x30] sm:$0xff] %v316_v1  ;;  %325 = vst [vmem:[%s509_s19 + $0x38] sm:$0xff] %v317_v2 }
  0x9b   : > { %322 = vst [vmem:[%s509_s19 + $0x20] sm:$0xff] %v314_v3  ;;  %323 = vst [vmem:[%s509_s19 + $0x28] sm:$0xff] %v315_v4 }
  0x9c PF: > { %s14_s15 = sadd.s32 1, %s426_s15  }
  0x9d   : > { %p11_p4 = scmp.ge.s32.totalorder %s14_s15, 4  }
  0x9f   :  { %13 = sbr.rel (!%p11_p4) target bundleno = 1 (0x1), region = 69 }

// kernel: bottle_block_forward.6
= control target key start
LH: loop header
LB: loop body
LE: loop exit
PB: predicated region body
PF: predicated region fallthrough
CT: control target
= control target key end

     0   :  { %s670_s21 = smov 0   ;;  %s718_s0 = inlined_call_operand.vmem [shape: bf16[2,8,256], index: 0, kind: input, shape index: {}]   ;;  %s719_s1 = inlined_call_operand.vmem [shape: f32[8,1], index: 1, kind: input, shape index: {}]   ;;  %s720_s2 = inlined_call_operand.vmem [shape: f32[8,1], index: 2, kind: input, shape index: {}]   ;;  %s721_s3 = inlined_call_operand.vmem [shape: bf16[32,8], index: 3, kind: input, shape index: {}]   ;;  %s722_s4 = inlined_call_operand.vmem [shape: bf16[2,32,256], index: 4, kind: output, shape index: {0}]   ;;  %s723_s5 = inlined_call_operand.vmem [shape: f32[2,32,1], index: 5, kind: output, shape index: {1}]   ;;  %s724_s6 = inlined_call_operand.vmem [shape: f32[2,32,1], index: 6, kind: output, shape index: {2}]  }
   0x1 LB: > { %s580_s22 = sadd.s32 4294967295, %s632_s21   ;;  %p584_p0 = scmp.ge.s32.totalorder %s632_s21, 1  ;;  %s632_s21 = sphi %s670_s21, %s17_s21  }
   0x2   : > { %p217_p1 = scmp.lt.s32.totalorder %s632_s21, 3 }
   0x4   : > { %p218_p2 = pnand %p584_p0, %p217_p1 }
   0x5   : > { %v281_v0 = vld [vmem:[%s719_s1] sm:$0xff] (!%p218_p2)  ;;  %v634_v1 = vmov (!%p218_p2), 0   ;;  %p257_p3 = scmp.lt.s32.totalorder (!%p218_p2), %s580_s22, 1  ;;  %vm322_vm0 = vcmask (!%p218_p2), 1043456   ;;  %v625_v18 = vld [vmem:[%s721_s3 + $0x8] sm:$0xff] (!%p218_p2)   ;;  %vm315_vm1 = vcmask (!%p218_p2), 64512  }
   0x6   : > { %221 = sbr.rel (%p218_p2) target bundleno = 538 (0x21a), region = 36  ;;  %623 = vset.pattern.permute.xlu0 (!%p218_p2), %v634_v1  ;;  %361 = vmatprep.mubr.bf16.mxu0 (!%p218_p2), %v634_v1  ;;  %v289_v2 = vld [vmem:[%s720_s2] sm:$0xff] (!%p218_p2)  ;;  %vm430_vm2 = vcmask (!%p218_p2), 7168  }
   0x7   : > { %284 = vperm.xlu0 (!%p218_p2), %623, %v281_v0   ;;  %371 = vmatprep.mubr.bf16.mxu1 (!%p218_p2), %v634_v1  ;;  %v624_v17 = vld [vmem:[%s721_s3] sm:$0xff] (!%p218_p2)  }
   0xb   : > { %292 = vperm.xlu0 (!%p218_p2), %623, %v289_v2  }
   0xd   : > { %s726_s22 = smov (!%p257_p3, %s580_s22), 1 }
   0xe   : > { %s604_s27 = sshll.u32 %s726_s22, 3  ;;  %s693_s11 = sshll.u32 %s726_s22, 5 }
   0xf   : > { %s261_s30 = scalar_lea.vmem %s718_s0, %s604_s27  ;;  %s266_s14 = scalar_lea.vmem %s722_s4, %s693_s11 }
  0x10   : > { %v278_v3 = vld [vmem:[%s261_s30] sm:$0xff]  ;;  %s271_s17 = scalar_lea.vmem %s723_s5, %s693_s11  ;;  %s276_s20 = scalar_lea.vmem %s724_s6, %s693_s11 }
  0x11   : > { %v279_v4 = vunpack.c.l.bf16 %v278_v3  ;;  %v280_v5 = vunpack.c.h.bf16 %v278_v3 }
  0x86   : > { %v285_v6 = vpop.permute.xlu0 %284 }
  0x87   : > { %v287_v7 = vmul.f32 %v285_v6, %v279_v4  ;;  %v288_v8 = vmul.f32 %v285_v6, %v280_v5 }
  0x8a   : > { %v293_v9 = vpop.permute.xlu0 %292 }
  0x8b   : > { %v295_v10 = vadd.f32 %v293_v9, %v287_v7  ;;  %v296_v11 = vadd.f32 %v293_v9, %v288_v8 }
  0x8d   : > { %v297_v12 = vmax.f32 %v295_v10, 0.0  ;;  %v298_v13 = vmax.f32 %v296_v11, 0.0 }
  0x8f   : > { %v304_v14 = vpack.c.bf16 %v298_v13, %v298_v13  ;;  %v303_v15 = vpack.c.bf16 %v297_v12, %v297_v12 }
  0x91   : > { %595 = vmatprep.subr.msk.bf16.mxu0 %vm322_vm0, %v304_v14  ;;  %612 = vmatprep.subr.msk.bf16.mxu1 %vm322_vm0, %v304_v14  ;;  %v324_v16 = vsel %vm322_vm0, %v303_v15, 0 }
  0x92   : > { %330 = vmatpush1.bf16.msra.mxu0 %v324_v16  ;;  %613 = vmatpush1.bf16.msra.mxu1 %v324_v16 }
  0x95   : > { %596 = vmatmul.mubr.msk.bf16.vlgmr.msra.gmra.mrb[0].mxu0 %vm315_vm1, %v624_v17  ;;  %597 = vmatmul.mubr.msk.bf16.vlgmr.msra.gmra.mrb[0].mxu1 %vm315_vm1, %v625_v18 }
 0x168   : > { %v363_v19 = vpop.f32.mrb[0].mxu0  ;;  %v373_v20 = vpop.f32.mrb[0].mxu1 }
 0x169   : > { %v365_v21 = vpop.f32.mrb[1].mxu0  ;;  %v375_v22 = vpop.f32.mrb[1].mxu1 }
 0x16a   : > { %v608_v23 = vpack.c.bf16 %v365_v21, %v363_v19  ;;  %v367_v24 = vpop.f32.mrb[2].mxu0  ;;  %v610_v25 = vpack.c.bf16 %v375_v22, %v373_v20  ;;  %v377_v26 = vpop.f32.mrb[2].mxu1 }
 0x16b   : > { %v382_v27 = vpack.c.bf16 %v367_v24, %v363_v19  ;;  %v369_v28 = vpop.f32.mrb[3].mxu0  ;;  %v384_v29 = vpack.c.bf16 %v377_v26, %v373_v20  ;;  %v379_v30 = vpop.f32.mrb[3].mxu1 }
 0x16c   : > { %406 = vst [vmem:[%s266_s14] sm:$0xff] %v608_v23  ;;  %v383_v31 = vpack.c.bf16 %v369_v28, %v365_v21  ;;  %v609_v32 = vpack.c.bf16 %v369_v28, %v367_v24  ;;  %408 = vst [vmem:[%s266_s14 + $0x10] sm:$0xff] %v610_v25  ;;  %v385_v33 = vpack.c.bf16 %v379_v30, %v375_v22 }
 0x16d   : > { %v611_v34 = vpack.c.bf16 %v379_v30, %v377_v26  ;;  %v410_v35 = vunpack.c.l.bf16 %v382_v27  ;;  %v412_v36 = vunpack.c.h.bf16 %v382_v27  ;;  %v414_v37 = vunpack.c.l.bf16 %v384_v29 }
 0x16e   : > { %v416_v38 = vunpack.c.h.bf16 %v384_v29  ;;  %407 = vst [vmem:[%s266_s14 + $0x8] sm:$0xff] %v609_v32  ;;  %v413_v39 = vunpack.c.h.bf16 %v383_v31  ;;  %v415_v40 = vunpack.c.l.bf16 %v385_v33  ;;  %v417_v41 = vunpack.c.h.bf16 %v385_v33 }
 0x16f   : > { %409 = vst [vmem:[%s266_s14 + $0x18] sm:$0xff] %v611_v34  ;;  %v411_v42 = vunpack.c.l.bf16 %v383_v31  ;;  %v435_v43 = vmul.f32 %v410_v35, %v410_v35  ;;  %v437_v44 = vmul.f32 %v412_v36, %v412_v36  ;;  %v439_v45 = vmul.f32 %v414_v37, %v414_v37 }
 0x170   : > { %v441_v46 = vmul.f32 %v416_v38, %v416_v38  ;;  %v421_v48 = vadd.f32 %v413_v39, %v412_v36  ;;  %v424_v49 = vadd.f32 %v415_v40, %v414_v37  ;;  %v427_v50 = vadd.f32 %v417_v41, %v416_v38 }
 0x171   : > { %v418_v47 = vadd.f32 %v411_v42, %v410_v35  ;;  %v436_v51 = vmul.f32 %v411_v42, %v411_v42  ;;  %v438_v52 = vmul.f32 %v413_v39, %v413_v39  ;;  %v440_v53 = vmul.f32 %v415_v40, %v415_v40 }
 0x172   : > { %v442_v54 = vmul.f32 %v417_v41, %v417_v41  ;;  %425 = vadd.xlane.f32.xlu0 %v424_v49 }
 0x173   : > { %419 = vadd.xlane.f32.xlu1 %v418_v47  ;;  %v443_v55 = vadd.f32 %v436_v51, %v435_v43  ;;  %v446_v56 = vadd.f32 %v438_v52, %v437_v44  ;;  %v449_v57 = vadd.f32 %v440_v53, %v439_v45 }
 0x174   : > { %v452_v58 = vadd.f32 %v442_v54, %v441_v46 }
 0x177   : > { %422 = vadd.xlane.f32.xlu1 %v421_v48 }
 0x17b   : > { %428 = vadd.xlane.f32.xlu1 %v427_v50 }
 0x17f   : > { %444 = vadd.xlane.f32.xlu1 %v443_v55 }
 0x183   : > { %447 = vadd.xlane.f32.xlu1 %v446_v56 }
 0x187   : > { %450 = vadd.xlane.f32.xlu1 %v449_v57 }
 0x18b   : > { %453 = vadd.xlane.f32.xlu1 %v452_v58 }
 0x1ff   : > { %v426_v60 = vpop.xlane.xlu0 %425 }
 0x200   : > { %v420_v59 = vpop.xlane.xlu1 %419  ;;  %433 = vst.msk [vmem:[%s271_s17 + $0x10] sm:$0xff] %vm430_vm2, %v426_v60 }
 0x201   : > { %431 = vst.msk [vmem:[%s271_s17] sm:$0xff] %vm430_vm2, %v420_v59 }
 0x204   : > { %v423_v61 = vpop.xlane.xlu1 %422 }
 0x205   : > { %432 = vst.msk [vmem:[%s271_s17 + $0x8] sm:$0xff] %vm430_vm2, %v423_v61 }
 0x208   : > { %v429_v62 = vpop.xlane.xlu1 %428 }
 0x209   : > { %434 = vst.msk [vmem:[%s271_s17 + $0x18] sm:$0xff] %vm430_vm2, %v429_v62 }
 0x20c   : > { %v445_v63 = vpop.xlane.xlu1 %444 }
 0x20d   : > { %455 = vst.msk [vmem:[%s276_s20] sm:$0xff] %vm430_vm2, %v445_v63 }
 0x210   : > { %v448_v0 = vpop.xlane.xlu1 %447 }
 0x211   : > { %456 = vst.msk [vmem:[%s276_s20 + $0x8] sm:$0xff] %vm430_vm2, %v448_v0 }
 0x214   : > { %v451_v1 = vpop.xlane.xlu1 %450 }
 0x215   : > { %457 = vst.msk [vmem:[%s276_s20 + $0x10] sm:$0xff] %vm430_vm2, %v451_v1 }
 0x218   : > { %v454_v2 = vpop.xlane.xlu1 %453 }
 0x219   : > { %458 = vst.msk [vmem:[%s276_s20 + $0x18] sm:$0xff] %vm430_vm2, %v454_v2 }
 0x21a PF: > { %s17_s21 = sadd.s32 1, %s632_s21  }
 0x21b   : > { %p14_p4 = scmp.ge.s32.totalorder %s17_s21, 4  }
 0x21d   :  { %16 = sbr.rel (!%p14_p4) target bundleno = 1 (0x1), region = 90 }

// kernel: bottle_block_forward.4
= control target key start
LH: loop header
LB: loop body
LE: loop exit
PB: predicated region body
PF: predicated region fallthrough
CT: control target
= control target key end

     0   :  { %s478_s15 = smov 0   ;;  %s504_s0 = inlined_call_operand.vmem [shape: f32[2,32,256], index: 0, kind: input, shape index: {}]   ;;  %s505_s1 = inlined_call_operand.vmem [shape: bf16[8,32], index: 1, kind: input, shape index: {}]   ;;  %s506_s2 = inlined_call_operand.vmem [shape: bf16[2,8,256], index: 2, kind: output, shape index: {0}]   ;;  %s507_s3 = inlined_call_operand.vmem [shape: f32[2,8,1], index: 3, kind: output, shape index: {1}]   ;;  %s508_s4 = inlined_call_operand.vmem [shape: f32[2,8,1], index: 4, kind: output, shape index: {2}]  }
   0x1 LB: > { %s417_s16 = sadd.s32 4294967295, %s450_s15   ;;  %p421_p0 = scmp.ge.s32.totalorder %s450_s15, 1  ;;  %s450_s15 = sphi %s478_s15, %s15_s15  }
   0x2   : > { %p167_p1 = scmp.lt.s32.totalorder %s450_s15, 3 }
   0x4   : > { %p168_p2 = pnand %p421_p0, %p167_p1 }
   0x5   : > { %p201_p3 = scmp.lt.s32.totalorder (!%p168_p2), %s417_s16, 1  ;;  %v452_v0 = vmov (!%p168_p2), 0   ;;  %v232_v13 = vld [vmem:[%s505_s1] sm:$0xf] (!%p168_p2)  ;;  %vm233_vm0 = vcmask (!%p168_p2), 261120   ;;  %vm292_vm1 = vcmask (!%p168_p2), 7168  }
   0x6   : > { %171 = sbr.rel (%p168_p2) target bundleno = 393 (0x189), region = 28  ;;  %269 = vmatprep.mubr.bf16.mxu0 (!%p168_p2), %v452_v0 }
   0xd   : > { %s510_s16 = smov (!%p201_p3, %s417_s16), 1 }
   0xe   : > { %s432_s17 = sshll.u32 %s510_s16, 6  ;;  %s433_s23 = sshll.u32 %s510_s16, 3 }
   0xf   : > { %s205_s20 = scalar_lea.vmem %s504_s0, %s432_s17  ;;  %s210_s26 = scalar_lea.vmem %s506_s2, %s433_s23 }
  0x10   : > { %v221_v1 = vld [vmem:[%s205_s20 + $0x8] sm:$0xff]  ;;  %v223_v2 = vld [vmem:[%s205_s20 + $0x18] sm:$0xff]  ;;  %v220_v3 = vld [vmem:[%s205_s20] sm:$0xff]  ;;  %s214_s29 = scalar_lea.vmem %s507_s3, %s433_s23  ;;  %s218_s6 = scalar_lea.vmem %s508_s4, %s433_s23 }
  0x11   : > { %v229_v4 = vpack.c.bf16 %v223_v2, %v221_v1  ;;  %v222_v5 = vld [vmem:[%s205_s20 + $0x10] sm:$0xff]  ;;  %v225_v6 = vld [vmem:[%s205_s20 + $0x28] sm:$0xff]  ;;  %v227_v7 = vld [vmem:[%s205_s20 + $0x38] sm:$0xff] }
  0x12   : > { %v228_v8 = vpack.c.bf16 %v222_v5, %v220_v3  ;;  %v231_v9 = vpack.c.bf16 %v227_v7, %v225_v6  ;;  %v224_v10 = vld [vmem:[%s205_s20 + $0x20] sm:$0xff]  ;;  %v226_v11 = vld [vmem:[%s205_s20 + $0x30] sm:$0xff] }
  0x13   : > { %237 = vmatprep.subr.bf16.mxu0 %v229_v4  ;;  %v230_v12 = vpack.c.bf16 %v226_v11, %v224_v10 }
  0x14   : > { %238 = vmatpush1.bf16.msra.mxu0 %v228_v8 }
  0x15   : > { %239 = vmatprep.subr.bf16.mxu0 %v231_v9 }
  0x18   : > { %240 = vmatpush1.bf16.msra.mxu0 %v230_v12 }
  0x1b   : > { %428 = vmatmul.mubr.msk.bf16.vlgmr.msra.gmra.mrb[0].mxu0 %vm233_vm0, %v232_v13 }
  0xee   : > { %v271_v14 = vpop.f32.mrb[0].mxu0 }
  0xef   : > { %v278_v15 = vpack.c.bf16 %v271_v14, %v271_v14  ;;  %v273_v16 = vpop.f32.mrb[1].mxu0 }
  0xf0   : > { %v279_v17 = vpack.c.bf16 %v273_v16, %v273_v16  ;;  %v434_v18 = vpack.c.bf16 %v273_v16, %v271_v14  ;;  %v275_v19 = vpop.f32.mrb[2].mxu0 }
  0xf1   : > { %v276_v20 = vpop.f32.mrb[3].mxu0  ;;  %v287_v21 = vunpack.c.l.bf16 %v278_v15 }
  0xf2   : > { %286 = vst [vmem:[%s210_s26] sm:$0xff] %v434_v18  ;;  %v288_v22 = vunpack.c.l.bf16 %v279_v17 }
  0xf3   : > { %v294_v23 = vmul.f32 %v287_v21, %v287_v21 }
  0xf4   : > { %v289_v24 = vadd.f32 %v288_v22, %v287_v21  ;;  %v295_v25 = vmul.f32 %v288_v22, %v288_v22 }
  0xf6   : > { %290 = vadd.xlane.f32.xlu0 %v289_v24  ;;  %v296_v26 = vadd.f32 %v295_v25, %v294_v23 }
  0xfa   : > { %297 = vadd.xlane.f32.xlu0 %v296_v26 }
 0x183   : > { %v291_v27 = vpop.xlane.xlu0 %290 }
 0x184   : > { %293 = vst.msk [vmem:[%s214_s29] sm:$0xff] %vm292_vm1, %v291_v27 }
 0x187   : > { %v298_v28 = vpop.xlane.xlu0 %297 }
 0x188   : > { %299 = vst.msk [vmem:[%s218_s6] sm:$0xff] %vm292_vm1, %v298_v28 }
 0x189 PF: > { %s15_s15 = sadd.s32 1, %s450_s15  }
 0x18a   : > { %p12_p4 = scmp.ge.s32.totalorder %s15_s15, 4  }
 0x18c   :  { %14 = sbr.rel (!%p12_p4) target bundleno = 1 (0x1), region = 82 }

// kernel: bottle_block_forward.5
= control target key start
LH: loop header
LB: loop body
LE: loop exit
PB: predicated region body
PF: predicated region fallthrough
CT: control target
= control target key end

     0   :  { %s856_s24 = smov 0   ;;  %s1086_s0 = inlined_call_operand.vmem [shape: bf16[2,8,256], index: 0, kind: input, shape index: {}]   ;;  %s1087_s1 = inlined_call_operand.vmem [shape: s32[1,256], index: 1, kind: input, shape index: {}]   ;;  %s1088_s2 = inlined_call_operand.vmem [shape: f32[8,1], index: 2, kind: input, shape index: {}]   ;;  %s1089_s3 = inlined_call_operand.vmem [shape: f32[8,1], index: 3, kind: input, shape index: {}]   ;;  %s1090_s4 = inlined_call_operand.vmem [shape: bf16[8,72], index: 4, kind: input, shape index: {}]   ;;  %s1091_s5 = inlined_call_operand.vmem [shape: bf16[2,8,256], index: 5, kind: output, shape index: {0}]   ;;  %s1092_s6 = inlined_call_operand.vmem [shape: f32[2,8,1], index: 6, kind: output, shape index: {1}]   ;;  %s1093_s7 = inlined_call_operand.vmem [shape: f32[2,8,1], index: 7, kind: output, shape index: {2}]  }
   0x1 LB: > { %s696_s25 = sadd.s32 4294967295, %s804_s24   ;;  %p700_p0 = scmp.ge.s32.totalorder %s804_s24, 1  ;;  %s804_s24 = sphi %s856_s24, %s18_s24  }
   0x2   : > { %p242_p1 = scmp.lt.s32.totalorder %s804_s24, 3 }
   0x4   : > { %p243_p2 = pnand %p700_p0, %p242_p1 }
   0x5   : > { %v304_v0 = vld [vmem:[%s1088_s2] sm:$0xff] (!%p243_p2)  ;;  %v806_v1 = vmov (!%p243_p2), 0   ;;  %p282_p3 = scmp.lt.s32.totalorder (!%p243_p2), %s696_s25, 1  ;;  %s807_s11 = smov (!%p243_p2), 15   ;;  %v322_v15 = vlaneseq (!%p243_p2) }
   0x6   : > { %246 = sbr.rel (%p243_p2) target bundleno = 653 (0x28d), region = 40  ;;  %757 = vset.pattern.permute.xlu0 (!%p243_p2), %v806_v1  ;;  %548 = vmatprep.mubr.bf16.mxu0 (!%p243_p2), %v806_v1  ;;  %v312_v2 = vld [vmem:[%s1089_s3] sm:$0xff] (!%p243_p2)  ;;  %s808_s12 = smov (!%p243_p2), 17  }
   0x7   : > { %307 = vperm.xlu0 (!%p243_p2), %757, %v304_v0   ;;  %s809_s13 = smov (!%p243_p2), 127   ;;  %s810_s14 = smov (!%p243_p2), 16   ;;  %v325_v16 = vld [vmem:[%s1087_s1] sm:$0x3] (!%p243_p2)  ;;  %v338_v17 = vshrl.u32 (!%p243_p2), %v322_v15, 7  ;;  %v897_v22 = vand.u32 (!%p243_p2), 127, %v322_v15 }
   0x8   : > { %s811_s15 = smov (!%p243_p2), 112   ;;  %s812_s16 = smov (!%p243_p2), 1   ;;  %vm335_vm0 = vcmp.ge.s32.totalorder (!%p243_p2), %v325_v16, 1  ;;  %vm383_vm1 = vcmp.lt.s32.totalorder (!%p243_p2), %v325_v16, 15 }
   0x9   : > { %s813_s17 = smov (!%p243_p2), 113   ;;  %s814_s18 = smov (!%p243_p2), 111   ;;  %v891_v18 = vsub.s32 (!%p243_p2), 0, %v338_v17  ;;  %v336_v19 = vsel (!%p243_p2), %vm335_vm0, 1, %v806_v1  ;;  %v343_v20 = vsub.s32 (!%p243_p2), 1, %v338_v17  ;;  %v384_v24 = vsel (!%p243_p2), %vm383_vm1, 1, %v806_v1 }
   0xa   : > { %vm333_vm2 = vcmp.ge.s32.totalorder (!%p243_p2), %v897_v22, 16  ;;  %v915_v27 = vadd.s32 (!%p243_p2), 128, %v897_v22  ;;  %vm380_vm10 = vcmp.lt.s32.totalorder (!%p243_p2), %v897_v22, 15  ;;  %vm330_vm12 = vcmp.lt.s32.totalorder (!%p243_p2), %v897_v22, 17 }
   0xb   : > { %315 = vperm.xlu0 (!%p243_p2), %757, %v312_v2   ;;  %v895_v21 = vrot.slane (!%p243_p2), %v336_v19, %v891_v18  ;;  %v899_v23 = vrot.slane (!%p243_p2), %v336_v19, %v343_v20  ;;  %v905_v25 = vrot.slane (!%p243_p2), %v384_v24, %v891_v18  ;;  %v912_v26 = vrot.slane (!%p243_p2), %v384_v24, %v343_v20 }
   0xc   : > { %vm1094_vm9 = vcmp.lt.s32.totalorder (!%p243_p2), %v915_v27, 240  ;;  %vm367_vm14 = vcmp.lt.s32.totalorder (!%p243_p2), %v897_v22, 16  ;;  %vm415_vm0 = vcmp.lt.s32.totalorder (!%p243_p2), %v897_v22, 1 }
   0xd   : > { %s1117_s25 = smov (!%p282_p3, %s696_s25), 1  ;;  %vm345_vm3 = vcmp.ne.s32.totalorder %v895_v21, 0  ;;  %vm346_vm4 = vcmp.ne.s32.totalorder %v899_v23, 0  ;;  %vm393_vm6 = vcmp.ne.s32.totalorder %v905_v25, 0  ;;  %vm394_vm8 = vcmp.ne.s32.totalorder %v912_v26, 0 }
   0xe   : > { %s872_s30 = sshll.u32 %s1117_s25, 3  ;;  %vm347_vm5 = vmand %vm333_vm2, %vm345_vm3  ;;  %v350_v28 = vsel %vm346_vm4, 1, %v806_v1  ;;  %v398_v34 = vsel %vm394_vm8, 1, %v806_v1  ;;  %vm418_vm11 = vcmp.eq.s32.totalorder %v895_v21, 1  ;;  %v480_v47 = vsel %vm393_vm6, 1, %v806_v1 }
   0xf   : > { %s286_s10 = scalar_lea.vmem %s1086_s0, %s872_s30  ;;  %v349_v29 = vsel %vm347_vm5, 1, %v806_v1  ;;  %v358_v30 = vrot.slane %v350_v28, %v891_v18  ;;  %vm395_vm7 = vmand %vm333_vm2, %vm393_vm6  ;;  %vm419_vm5 = vcmp.eq.s32.totalorder %v899_v23, 1  ;;  %v406_v42 = vrot.slane %v398_v34, %v891_v18  ;;  %s291_s26 = scalar_lea.vmem %s1091_s5, %s872_s30 }
  0x10   : > { %v301_v3 = vld [vmem:[%s286_s10] sm:$0xff]  ;;  %v354_v31 = vrot.slane %v349_v29, %v891_v18  ;;  %v397_v35 = vsel %vm395_vm7, 1, %v806_v1  ;;  %vm443_vm15 = vmand %vm1094_vm9, %vm346_vm4  ;;  %vm430_vm4 = vcmp.eq.s32.totalorder %v912_v26, 1  ;;  %v444_v2 = vsel %vm345_vm3, 1, %v806_v1  ;;  %s295_s29 = scalar_lea.vmem %s1092_s6, %s872_s30  ;;  %s299_s10 = scalar_lea.vmem %s1093_s7, %s872_s30 }
  0x11   : > { %v302_v4 = vunpack.c.l.bf16 %v301_v3  ;;  %v303_v5 = vunpack.c.h.bf16 %v301_v3  ;;  %vm937_vm13 = vcmp.eq.s32.totalorder %v358_v30, 1  ;;  %v402_v43 = vrot.slane %v397_v35, %v891_v18  ;;  %vm479_vm7 = vmand %vm1094_vm9, %vm394_vm8 }
  0x12   : > { %vm947_vm1 = vcmp.eq.s32.totalorder %v354_v31, 1  ;;  %v445_v46 = vsel %vm443_vm15, 1, %v806_v1  ;;  %vm815_vm15 = vmmov 1   ;;  %v481_v0 = vsel %vm479_vm7, 1, %v806_v1 }
  0x13   : > { %vm707_vm6 = vmpackc.low %vm815_vm15, %vm937_vm13  ;;  %vm988_vm9 = vcmp.eq.s32.totalorder %v402_v43, 1  ;;  %vm1105_vm13 = vcmp.lt.s32.totalorder %v897_v22, 127  ;;  %v489_v17 = vrot.slane %v481_v0, %v891_v18  ;;  %v449_v19 = vrot.slane %v444_v2, %v891_v18 }
  0x14   : > { %vm980_vm8 = vmpackc.low %vm333_vm2, %vm947_vm1  ;;  %vm429_vm2 = vcmp.eq.s32.totalorder %v905_v25, 1  ;;  %vm1107_vm1 = vcmp.lt.s32.totalorder %v897_v22, 113 }
  0x15   : > { %vm1032_vm7 = vcmp.eq.s32.totalorder %v489_v17, 1 }
  0x86   : > { %v308_v6 = vpop.permute.xlu0 %307 }
  0x87   : > { %v310_v7 = vmul.f32 %v308_v6, %v302_v4  ;;  %v311_v8 = vmul.f32 %v308_v6, %v303_v5  ;;  %v453_v5 = vrot.slane %v445_v46, %v891_v18  ;;  %v485_v6 = vrot.slane %v480_v47, %v891_v18 }
  0x8a   : > { %v316_v9 = vpop.permute.xlu0 %315 }
  0x8b   : > { %v878_v10 = vadd.f32 %v316_v9, %v310_v7  ;;  %v880_v11 = vadd.f32 %v316_v9, %v311_v8 }
  0x8d   : > { %v320_v12 = vmax.f32 %v878_v10, 0.0  ;;  %v321_v13 = vmax.f32 %v880_v11, 0.0 }
  0x8f   : > { %v768_v14 = vpack.i.bf16 %v321_v13, %v320_v12 }
  0x91   : > { %769 = vrot.lane.b32.xlu0 %v768_v14, %s807_s11  ;;  %759 = vrot.lane.b32.xlu1 %v768_v14, %s808_s12 }
  0x95   : > { %779 = vrot.lane.b32.xlu0 %v768_v14, %s809_s13  ;;  %764 = vrot.lane.b32.xlu1 %v768_v14, %s810_s14 }
  0x99   : > { %789 = vrot.lane.b32.xlu0 %v768_v14, %s811_s15  ;;  %774 = vrot.lane.b32.xlu1 %v768_v14, %s812_s16 }
  0x9d   : > { %784 = vrot.lane.b32.xlu1 %v768_v14, %s813_s17 }
  0xa1   : > { %794 = vrot.lane.b32.xlu1 %v768_v14, %s814_s18 }
 0x103   : > { %v770_v32 = vpop.permute.xlu0 %769  ;;  %v760_v33 = vpop.permute.xlu1 %759 }
 0x104   : > { %v762_v36 = vunpack.i.h.bf16 %v760_v33  ;;  %v761_v37 = vunpack.i.l.bf16 %v760_v33  ;;  %v772_v48 = vunpack.i.h.bf16 %v770_v32  ;;  %v771_v49 = vunpack.i.l.bf16 %v770_v32 }
 0x106   : > { %v331_v50 = vsel %vm330_vm12, %v761_v37, %v762_v36  ;;  %v332_v51 = vsel %vm330_vm12, %v762_v36, %v761_v37  ;;  %vm984_vm12 = vcmp.eq.s32.totalorder %v406_v42, 1  ;;  %v381_v3 = vsel %vm380_vm10, %v771_v49, %v772_v48 }
 0x107   : > { %v780_v40 = vpop.permute.xlu0 %779  ;;  %v765_v41 = vpop.permute.xlu1 %764  ;;  %v382_v7 = vsel %vm380_vm10, %v772_v48, %v771_v49  ;;  %vm713_vm3 = vmpackc.low %vm419_vm5, %vm984_vm12  ;;  %vm475_vm5 = vcmp.lt.s32.totalorder %v897_v22, 111  ;;  %vm1114_vm12 = vcmp.lt.s32.totalorder %v915_v27, 240 }
 0x108   : > { %v767_v44 = vunpack.i.h.bf16 %v765_v41  ;;  %v766_v45 = vunpack.i.l.bf16 %v765_v41  ;;  %v782_v52 = vunpack.i.h.bf16 %v780_v40  ;;  %v781_v53 = vunpack.i.l.bf16 %v780_v40  ;;  %vm716_vm10 = vmpackc.low %vm418_vm11, %vm988_vm9  ;;  %v504_v41 = vld [vmem:[%s1090_s4] sm:$0xf] }
 0x109   : > { %vm462_vm9 = vcmp.lt.s32.totalorder %v897_v22, 112  ;;  %vm455_vm11 = vcmp.eq.s32.totalorder %v453_v5, 1 }
 0x10a   : > { %v368_v54 = vsel %vm367_vm14, %v766_v45, %v767_v44  ;;  %v369_v55 = vsel %vm367_vm14, %v767_v44, %v766_v45  ;;  %v428_v8 = vsel %vm1105_vm13, %v782_v52, %v781_v53  ;;  %vm719_vm14 = vmpackc.low %vm430_vm4, %vm815_vm15 }
 0x10b   : > { %v775_v56 = vpop.permute.xlu1 %774  ;;  %v708_v57 = vpack.c.bf16 %v368_v54, %v331_v50  ;;  %v711_v59 = vpack.c.bf16 %v369_v55, %v332_v51  ;;  %v790_v4 = vpop.permute.xlu0 %789  ;;  %v720_v30 = vpack.c.bf16 %v428_v8, %v321_v13  ;;  %vm722_vm4 = vmpackc.low %vm429_vm2, %vm815_vm15 }
 0x10c   : > { %v777_v62 = vunpack.i.h.bf16 %v775_v56  ;;  %v776_v63 = vunpack.i.l.bf16 %v775_v56  ;;  %v792_v20 = vunpack.i.h.bf16 %v790_v4  ;;  %v791_v24 = vunpack.i.l.bf16 %v790_v4  ;;  %vm1115_vm2 = vmmov %vm1107_vm1 }
 0x10d   : > { %709 = vmatprep.subr.msk.bf16.mxu0 %vm707_vm6, %v708_v57  ;;  %vm1039_vm6 = vcmp.eq.s32.totalorder %v449_v19, 1 }
 0x10e   : > { %v416_v1 = vsel %vm415_vm0, %v776_v63, %v777_v62  ;;  %v417_v9 = vsel %vm415_vm0, %v777_v62, %v776_v63  ;;  %712 = vmatpush1.bf16.msk.msra.mxu0 %vm980_vm8, %v711_v59  ;;  %vm1106_vm0 = vmmov %vm1105_vm13  ;;  %vm1043_vm8 = vcmp.eq.s32.totalorder %v485_v6, 1  ;;  %v464_v32 = vsel %vm462_vm9, %v792_v20, %v791_v24 }
 0x10f   : > { %v714_v14 = vpack.c.bf16 %v416_v1, %v381_v3  ;;  %v717_v15 = vpack.c.bf16 %v417_v9, %v382_v7  ;;  %v785_v16 = vpop.permute.xlu1 %784  ;;  %v427_v23 = vsel %vm1106_vm0, %v781_v53, %v782_v52  ;;  %vm725_vm13 = vmpackc.low %vm1114_vm12, %vm455_vm11 }
 0x110   : > { %v787_v28 = vunpack.i.h.bf16 %v785_v16  ;;  %v786_v29 = vunpack.i.l.bf16 %v785_v16  ;;  %v723_v31 = vpack.c.bf16 %v427_v23, %v320_v12  ;;  %v463_v12 = vsel %vm462_vm9, %v791_v24, %v792_v20 }
 0x111   : > { %715 = vmatprep.subr.msk.bf16.mxu0 %vm713_vm3, %v714_v14  ;;  %vm728_vm3 = vmpackc.low %vm815_vm15, %vm1039_vm6  ;;  %vm571_vm15 = vcmask 7168  }
 0x112   : > { %v439_v18 = vsel %vm1107_vm1, %v787_v28, %v786_v29  ;;  %718 = vmatpush1.bf16.msk.msra.mxu0 %vm716_vm10, %v717_v15  ;;  %v438_v25 = vsel %vm1115_vm2, %v786_v29, %v787_v28  ;;  %vm509_vm10 = vcmask 1043456  }
 0x113   : > { %v795_v26 = vpop.permute.xlu1 %794  ;;  %721 = vmatprep.subr.msk.bf16.mxu0 %vm719_vm14, %v720_v30  ;;  %v726_v35 = vpack.c.bf16 %v464_v32, %v439_v18  ;;  %v729_v38 = vpack.c.bf16 %v463_v12, %v438_v25  ;;  %vm505_vm14 = vcmask 588800  }
 0x114   : > { %v797_v33 = vunpack.i.h.bf16 %v795_v26  ;;  %v796_v34 = vunpack.i.l.bf16 %v795_v26 }
 0x116   : > { %v477_v36 = vsel %vm475_vm5, %v797_v33, %v796_v34  ;;  %724 = vmatpush1.bf16.msk.msra.mxu0 %vm722_vm4, %v723_v31  ;;  %v476_v10 = vsel %vm475_vm5, %v796_v34, %v797_v33 }
 0x117   : > { %v493_v37 = vsel %vm1032_vm7, %v477_v36, 0.0  ;;  %727 = vmatprep.subr.msk.bf16.mxu0 %vm725_vm13, %v726_v35  ;;  %v492_v27 = vsel %vm1043_vm8, %v476_v10, 0.0 }
 0x118   : > { %v503_v39 = vpack.c.bf16 %v493_v37, %v493_v37  ;;  %v502_v40 = vpack.c.bf16 %v492_v27, %v492_v27 }
 0x11a   : > { %730 = vmatpush1.bf16.msk.msra.mxu0 %vm728_vm3, %v729_v38  ;;  %v511_v22 = vsel %vm509_vm10, %v502_v40, 0 }
 0x11b   : > { %731 = vmatprep.subr.msk.bf16.mxu0 %vm509_vm10, %v503_v39 }
 0x11e   : > { %525 = vmatpush1.bf16.msra.mxu0 %v511_v22 }
 0x121   : > { %732 = vmatmul.mubr.msk.bf16.vlgmr.msra.gmra.mrb[0].mxu0 %vm505_vm14, %v504_v41 }
 0x1f4   : > { %v550_v42 = vpop.f32.mrb[0].mxu0 }
 0x1f5   : > { %v557_v43 = vpack.c.bf16 %v550_v42, %v550_v42  ;;  %v552_v44 = vpop.f32.mrb[1].mxu0 }
 0x1f6   : > { %v558_v45 = vpack.c.bf16 %v552_v44, %v552_v44  ;;  %v738_v46 = vpack.c.bf16 %v552_v44, %v550_v42  ;;  %v554_v47 = vpop.f32.mrb[2].mxu0 }
 0x1f7   : > { %v566_v48 = vunpack.c.l.bf16 %v557_v43  ;;  %v555_v49 = vpop.f32.mrb[3].mxu0 }
 0x1f8   : > { %565 = vst [vmem:[%s291_s26] sm:$0xff] %v738_v46  ;;  %v567_v50 = vunpack.c.l.bf16 %v558_v45 }
 0x1f9   : > { %v573_v51 = vmul.f32 %v566_v48, %v566_v48 }
 0x1fa   : > { %v568_v52 = vadd.f32 %v567_v50, %v566_v48  ;;  %v574_v53 = vmul.f32 %v567_v50, %v567_v50 }
 0x1fc   : > { %569 = vadd.xlane.f32.xlu0 %v568_v52  ;;  %v575_v54 = vadd.f32 %v574_v53, %v573_v51 }
 0x1fe   : > { %576 = vadd.xlane.f32.xlu1 %v575_v54 }
 0x289   : > { %v570_v55 = vpop.xlane.xlu0 %569 }
 0x28a   : > { %572 = vst.msk [vmem:[%s295_s29] sm:$0xff] %vm571_vm15, %v570_v55 }
 0x28b   : > { %v577_v56 = vpop.xlane.xlu1 %576 }
 0x28c   : > { %578 = vst.msk [vmem:[%s299_s10] sm:$0xff] %vm571_vm15, %v577_v56 }
 0x28d PF: > { %s18_s24 = sadd.s32 1, %s804_s24  }
 0x28e   : > { %p15_p4 = scmp.ge.s32.totalorder %s18_s24, 4  }
 0x290   :  { %17 = sbr.rel (!%p15_p4) target bundleno = 1 (0x1), region = 94 }

</bundles_post_ra>
